<compile_context>
chip_gen: v7x
topology: tpu7x:2x2x1
jax: 0.10.0
libtpu: 0.0.40
codegen_flags: <defaults>
</compile_context>

<pallas_src>
import functools
import math

import jax
import jax.numpy as jnp
from jax import lax
from jax.experimental import pallas as pl
from jax.experimental.pallas import tpu as pltpu


# ---------------------------------------------------------------------------
# Pallas kernels
# ---------------------------------------------------------------------------
def _conv_gemm_kernel(w_ref, x_ref, b_ref, o_ref):
    # (Cout, Cin*k) @ (Cin*k, M) + b[:, None]  ->  lane-dense (Cout, M) output.
    acc = jnp.dot(w_ref[...], x_ref[...], preferred_element_type=jnp.float32)
    o_ref[...] = (acc + b_ref[...]).astype(o_ref.dtype)


def _head_kernel(x_ref, w4_ref, b4_ref, w5_ref, b5_ref, o_ref, *, slope):
    # 5_l1 (with eval BatchNorm folded in) -> LeakyReLU -> (Dropout: identity)
    # -> 9_l_f, all fused; the intermediate h never leaves VMEM/vregs.
    h = jnp.dot(x_ref[...], w4_ref[...], preferred_element_type=jnp.float32)
    h = h + b4_ref[...]
    h = jnp.where(h >= 0.0, h, slope * h)            # LeakyReLU, f32 epilogue
    y = jnp.dot(h, w5_ref[...], preferred_element_type=jnp.float32) + b5_ref[...]
    o_ref[...] = y.astype(o_ref.dtype)


# ---------------------------------------------------------------------------
# Pallas wrappers
# ---------------------------------------------------------------------------
def conv_gemm(w2d, x2d, b):
    """(Cout, K) @ (K, M) + b -> (Cout, M); single block, lane-dense output."""
    Cout, K = w2d.shape
    M = x2d.shape[1]
    return pl.pallas_call(
        _conv_gemm_kernel,
        out_shape=jax.ShapeDtypeStruct((Cout, M), x2d.dtype),
        grid=(1,),
        in_specs=[pl.BlockSpec((Cout, K), lambda i: (0, 0)),
                  pl.BlockSpec((K, M), lambda i: (0, 0)),
                  pl.BlockSpec((Cout, 1), lambda i: (0, 0))],
        out_specs=pl.BlockSpec((Cout, M), lambda i: (0, 0)),
        compiler_params=pltpu.CompilerParams(
            dimension_semantics=("arbitrary",)),
    )(w2d, x2d, b.reshape(Cout, 1))


def fused_head(flat, w4_eff, b4_eff, w5_pad, b5_pad, slope=0.01):
    """Fused Linear(+BN) -> LeakyReLU -> Linear, padded-to-128 output."""
    # TODO(synk): for large l_in / batch on v7x (32 MiB scoped VMEM), tile the
    # K dimension with a VMEM accumulator instead of one full (B, K) block.
    B, K = flat.shape
    Nh = w4_eff.shape[1]
    Np = w5_pad.shape[1]
    kernel = functools.partial(_head_kernel, slope=slope)
    return pl.pallas_call(
        kernel,
        out_shape=jax.ShapeDtypeStruct((B, Np), flat.dtype),
        grid=(1,),
        in_specs=[pl.BlockSpec((B, K), lambda i: (0, 0)),
                  pl.BlockSpec((K, Nh), lambda i: (0, 0)),
                  pl.BlockSpec((1, Nh), lambda i: (0, 0)),
                  pl.BlockSpec((Nh, Np), lambda i: (0, 0)),
                  pl.BlockSpec((1, Np), lambda i: (0, 0))],
        out_specs=pl.BlockSpec((B, Np), lambda i: (0, 0)),
        compiler_params=pltpu.CompilerParams(
            dimension_semantics=("arbitrary",)),
    )(flat, w4_eff, b4_eff.reshape(1, Nh), w5_pad, b5_pad.reshape(1, Np))


# ---------------------------------------------------------------------------
# Separable 3-D conv (kernel along a single spatial axis) as im2col + GEMM.
# Activations are kept channels-first / batch-second: (C, B, S0, S1, S2).
# ---------------------------------------------------------------------------
def conv3d_1axis(h, w2d, b, axis, k, s, pad):
    """h:(Cin,B,S0,S1,S2), w2d:(Cout,Cin*k), b:(Cout,) -> (Cout,B,S0',S1',S2')."""
    # TODO(synk): fuse this im2col tap gather into the Pallas kernel
    # (memory_space=pl.ANY + strided pl.ds reads) for real-size workloads; at
    # these toy sizes the XLA-side gather is negligible.
    pads = [(0, 0)] * 5
    pads[axis] = (pad, pad)
    hp = jnp.pad(h, pads)
    Lout = (h.shape[axis] + 2 * pad - k) // s + 1
    taps = []
    for t in range(k):
        sl = [slice(None)] * 5
        sl[axis] = slice(t, t + s * (Lout - 1) + 1, s)
        taps.append(hp[tuple(sl)])
    patches = jnp.stack(taps, axis=1)                  # (Cin, k, B, S0', S1', S2')
    out_dims = patches.shape[2:]
    Cin = h.shape[0]
    x2d = patches.reshape(Cin * k, math.prod(out_dims))
    y2d = conv_gemm(w2d, x2d, b)                       # Pallas MXU GEMM
    return y2d.reshape(w2d.shape[0], *out_dims)


# ---------------------------------------------------------------------------
# Parameter init (matches Discriminator.init_weights: xavier_uniform with
# gain = calculate_gain('leaky_relu', 0.01), biases = 0; BatchNorm defaults)
# ---------------------------------------------------------------------------
def xavier_uniform(key, shape, gain):
    if len(shape) == 2:                                  # Linear (out, in)
        fan_in, fan_out = shape[1], shape[0]
    else:                                                # Conv3d (out,in,kd,kh,kw)
        rf = shape[2] * shape[3] * shape[4]
        fan_in, fan_out = shape[1] * rf, shape[0] * rf
    bound = gain * math.sqrt(6.0 / (fan_in + fan_out))
    return jax.random.uniform(key, shape, jnp.float32, -bound, bound)


def make_params(key, c_in, c_out, conv_k, l_in, l_out, n_class):
    gain = math.sqrt(2.0 / (1.0 + 0.01 ** 2))            # leaky_relu(0.01) gain
    ks = jax.random.split(key, 5)
    return {
        "w1": xavier_uniform(ks[0], (c_out, c_in, conv_k, 1, 1), gain),
        "b1": jnp.zeros((c_out,), jnp.float32),
        "w2": xavier_uniform(ks[1], (c_out, c_out, 1, conv_k, 1), gain),
        "b2": jnp.zeros((c_out,), jnp.float32),
        "w3": xavier_uniform(ks[2], (c_out, c_out, 1, 1, conv_k), gain),
        "b3": jnp.zeros((c_out,), jnp.float32),
        "w4": xavier_uniform(ks[3], (l_out, l_in), gain),
        "b4": jnp.zeros((l_out,), jnp.float32),
        "w5": xavier_uniform(ks[4], (n_class, l_out), gain),
        "b5": jnp.zeros((n_class,), jnp.float32),
        "bn_gamma": jnp.ones((l_out,), jnp.float32),
        "bn_beta": jnp.zeros((l_out,), jnp.float32),
        "bn_mean": jnp.zeros((l_out,), jnp.float32),
        "bn_var": jnp.ones((l_out,), jnp.float32),
    }


def prepare_inference_params(p, bn_eps=1e-5):
    """One-time prep: reshape conv weights, fold eval-BN into l1, pad l_f to 128 lanes."""
    scale = p["bn_gamma"] / jnp.sqrt(p["bn_var"] + bn_eps)
    shift = p["bn_beta"] - p["bn_mean"] * scale
    n_class, l_out = p["w5"].shape
    n_pad = ((n_class + 127) // 128) * 128
    w5_pad = jnp.zeros((l_out, n_pad), p["w5"].dtype).at[:, :n_class].set(p["w5"].T)
    b5_pad = jnp.zeros((n_pad,), p["b5"].dtype).at[:n_class].set(p["b5"])
    return {
        "w1_2d": p["w1"].reshape(p["w1"].shape[0], -1), "b1": p["b1"],
        "w2_2d": p["w2"].reshape(p["w2"].shape[0], -1), "b2": p["b2"],
        "w3_2d": p["w3"].reshape(p["w3"].shape[0], -1), "b3": p["b3"],
        "w4_eff": (p["w4"] * scale[:, None]).T,          # (l_in, l_out), BN folded
        "b4_eff": p["b4"] * scale + shift,
        "w5_pad": w5_pad, "b5_pad": b5_pad,
    }


# ---------------------------------------------------------------------------
# Full forward pass (Pallas hot paths)
# ---------------------------------------------------------------------------
def discriminator_forward(x, ip, *, conv_k, conv_s, conv_pad, n_class, slope=0.01):
    # x: (B, Cin, D, H, W) NCDHW, exactly like the PyTorch module.
    h = jnp.moveaxis(x, 1, 0)                            # (Cin, B, D, H, W)
    h = conv3d_1axis(h, ip["w1_2d"], ip["b1"], axis=2, k=conv_k, s=conv_s, pad=conv_pad)
    h = conv3d_1axis(h, ip["w2_2d"], ip["b2"], axis=3, k=conv_k, s=conv_s, pad=conv_pad)
    h = conv3d_1axis(h, ip["w3_2d"], ip["b3"], axis=4, k=conv_k, s=conv_s, pad=conv_pad)
    h = jnp.moveaxis(h, 0, 1)                            # back to NCDHW flatten order
    flat = h.reshape(h.shape[0], -1)                     # 4_flat
    y = fused_head(flat, ip["w4_eff"], ip["b4_eff"],     # 5_l1+6_bn+7_act+8_drop+9_l_f
                   ip["w5_pad"], ip["b5_pad"], slope=slope)
    return y[:, :n_class]                                # drop lane padding


# ---------------------------------------------------------------------------
# Pure-JAX reference (lax conv) for correctness check
# ---------------------------------------------------------------------------
def reference_forward(x, p, conv_k, conv_s, conv_pad, bn_eps=1e-5):
    def conv(h, w, b, strides, pads):
        y = lax.conv_general_dilated(
            h, w, window_strides=strides, padding=pads,
            dimension_numbers=("NCDHW", "OIDHW", "NCDHW"))
        return y + b.reshape(1, -1, 1, 1, 1)

    h = conv(x, p["w1"], p["b1"], (conv_s, 1, 1), [(conv_pad, conv_pad), (0, 0), (0, 0)])
    h = conv(h, p["w2"], p["b2"], (1, conv_s, 1), [(0, 0), (conv_pad, conv_pad), (0, 0)])
    h = conv(h, p["w3"], p["b3"], (1, 1, conv_s), [(0, 0), (0, 0), (conv_pad, conv_pad)])
    flat = h.reshape(h.shape[0], -1)
    y = flat @ p["w4"].T + p["b4"]
    y = (y - p["bn_mean"]) / jnp.sqrt(p["bn_var"] + bn_eps) * p["bn_gamma"] + p["bn_beta"]
    y = jnp.where(y >= 0.0, y, 0.01 * y)
    return y @ p["w5"].T + p["b5"]


if __name__ == "__main__":
    # Module kwargs (small, consistent with the forward pass):
    B, c_in, c_out = 2, 4, 8
    D = H = W = 8
    conv_k, conv_s, conv_pad = 3, 1, 1
    l_in = c_out * D * H * W            # 8 * 8*8*8 = 4096 (spatial preserved)
    l_out, n_class = 32, 5              # n_class == n_domains

    key = jax.random.PRNGKey(0)
    kx, kp = jax.random.split(key)
    x = jax.random.normal(kx, (B, c_in, D, H, W), jnp.float32)
    params = make_params(kp, c_in, c_out, conv_k, l_in, l_out, n_class)
    infer_params = prepare_inference_params(params)

    fwd = jax.jit(functools.partial(
        discriminator_forward,
        conv_k=conv_k, conv_s=conv_s, conv_pad=conv_pad, n_class=n_class))
    out = fwd(x, infer_params)
    jax.block_until_ready(out)

    ref = reference_forward(x, params, conv_k, conv_s, conv_pad)
    assert out.shape == (B, n_class), out.shape
    assert jnp.allclose(out, ref, rtol=1e-4, atol=1e-4), \
        f"max abs diff {jnp.max(jnp.abs(out - ref))}"

    print("KERNEL_OK")
</pallas_src>

<mosaic_0001>
module attributes {stable_mosaic.version = 11 : i64} {
  func.func @_conv_gemm_kernel(%arg0: i32, %arg1: memref<8x12xf32, #tpu.memory_space<vmem>>, %arg2: memref<12x1024xf32, #tpu.memory_space<vmem>>, %arg3: memref<8x1xf32, #tpu.memory_space<vmem>>, %arg4: memref<8x1024xf32, #tpu.memory_space<vmem>>) attributes {dimension_semantics = [#tpu.dimension_semantics<arbitrary>], iteration_bounds = array<i64: 1>, scalar_prefetch = 0 : i64, scratch_operands = 0 : i64, tpu.core_type = #tpu.core_type<tc>, window_params = [{pipeline_mode = #tpu.pipeline_mode<synchronous>, transform_indices = @transform_0, window_bounds = array<i64: 8, 12>}, {pipeline_mode = #tpu.pipeline_mode<synchronous>, transform_indices = @transform_1, window_bounds = array<i64: 12, 1024>}, {pipeline_mode = #tpu.pipeline_mode<synchronous>, transform_indices = @transform_2, window_bounds = array<i64: 8, 1>}, {pipeline_mode = #tpu.pipeline_mode<synchronous>, transform_indices = @transform_3, window_bounds = array<i64: 8, 1024>}]} {
    %c0 = arith.constant 0 : index
    %c0_0 = arith.constant 0 : index
    %0 = vector.load %arg1[%c0, %c0_0] : memref<8x12xf32, #tpu.memory_space<vmem>>, vector<8x12xf32>
    %c0_1 = arith.constant 0 : index
    %c0_2 = arith.constant 0 : index
    %1 = vector.load %arg2[%c0_1, %c0_2] : memref<12x1024xf32, #tpu.memory_space<vmem>>, vector<12x1024xf32>
    %cst = arith.constant dense<0.000000e+00> : vector<8x1024xf32>
    %2 = tpu.matmul %0, %1, %cst {dimension_numbers = #tpu.dot_dimension_numbers<[1], [0], [0], [1], [0, 0, 1, 1], [], []>} : vector<8x12xf32>, vector<12x1024xf32>, vector<8x1024xf32> -> vector<8x1024xf32>
    %c0_3 = arith.constant 0 : index
    %c0_4 = arith.constant 0 : index
    %3 = vector.load %arg3[%c0_3, %c0_4] : memref<8x1xf32, #tpu.memory_space<vmem>>, vector<8x1xf32>
    %4 = vector.broadcast %3 : vector<8x1xf32> to vector<8x1024xf32>
    %5 = arith.addf %2, %4 : vector<8x1024xf32>
    %c0_5 = arith.constant 0 : index
    %c0_6 = arith.constant 0 : index
    %6 = vector.load %arg4[%c0_5, %c0_6] : memref<8x1024xf32, #tpu.memory_space<vmem>>, vector<8x1024xf32>
    tpu.vector_store %arg4[%c0_5, %c0_6], %5 {strides = array<i32>} : memref<8x1024xf32, #tpu.memory_space<vmem>>, vector<8x1024xf32>,
    return
  }
  func.func @transform_0(%arg0: i32) -> (i32, i32) {
    %c0_i32 = arith.constant 0 : i32
    %c0_i32_0 = arith.constant 0 : i32
    %c0_i32_1 = arith.constant 0 : i32
    return %c0_i32, %c0_i32_0 : i32, i32
  }
  func.func @transform_1(%arg0: i32) -> (i32, i32) {
    %c0_i32 = arith.constant 0 : i32
    %c0_i32_0 = arith.constant 0 : i32
    %c0_i32_1 = arith.constant 0 : i32
    return %c0_i32, %c0_i32_0 : i32, i32
  }
  func.func @transform_2(%arg0: i32) -> (i32, i32) {
    %c0_i32 = arith.constant 0 : i32
    %c0_i32_0 = arith.constant 0 : i32
    %c0_i32_1 = arith.constant 0 : i32
    return %c0_i32, %c0_i32_0 : i32, i32
  }
  func.func @transform_3(%arg0: i32) -> (i32, i32) {
    %c0_i32 = arith.constant 0 : i32
    %c0_i32_0 = arith.constant 0 : i32
    %c0_i32_1 = arith.constant 0 : i32
    return %c0_i32, %c0_i32_0 : i32, i32
  }
}

module attributes {stable_mosaic.version = 11 : i64} {
  func.func @_conv_gemm_kernel(%arg0: i32, %arg1: memref<8x24xf32, #tpu.memory_space<vmem>>, %arg2: memref<24x1024xf32, #tpu.memory_space<vmem>>, %arg3: memref<8x1xf32, #tpu.memory_space<vmem>>, %arg4: memref<8x1024xf32, #tpu.memory_space<vmem>>) attributes {dimension_semantics = [#tpu.dimension_semantics<arbitrary>], iteration_bounds = array<i64: 1>, scalar_prefetch = 0 : i64, scratch_operands = 0 : i64, tpu.core_type = #tpu.core_type<tc>, window_params = [{pipeline_mode = #tpu.pipeline_mode<synchronous>, transform_indices = @transform_0, window_bounds = array<i64: 8, 24>}, {pipeline_mode = #tpu.pipeline_mode<synchronous>, transform_indices = @transform_1, window_bounds = array<i64: 24, 1024>}, {pipeline_mode = #tpu.pipeline_mode<synchronous>, transform_indices = @transform_2, window_bounds = array<i64: 8, 1>}, {pipeline_mode = #tpu.pipeline_mode<synchronous>, transform_indices = @transform_3, window_bounds = array<i64: 8, 1024>}]} {
    %c0 = arith.constant 0 : index
    %c0_0 = arith.constant 0 : index
    %0 = vector.load %arg1[%c0, %c0_0] : memref<8x24xf32, #tpu.memory_space<vmem>>, vector<8x24xf32>
    %c0_1 = arith.constant 0 : index
    %c0_2 = arith.constant 0 : index
    %1 = vector.load %arg2[%c0_1, %c0_2] : memref<24x1024xf32, #tpu.memory_space<vmem>>, vector<24x1024xf32>
    %cst = arith.constant dense<0.000000e+00> : vector<8x1024xf32>
    %2 = tpu.matmul %0, %1, %cst {dimension_numbers = #tpu.dot_dimension_numbers<[1], [0], [0], [1], [0, 0, 1, 1], [], []>} : vector<8x24xf32>, vector<24x1024xf32>, vector<8x1024xf32> -> vector<8x1024xf32>
    %c0_3 = arith.constant 0 : index
    %c0_4 = arith.constant 0 : index
    %3 = vector.load %arg3[%c0_3, %c0_4] : memref<8x1xf32, #tpu.memory_space<vmem>>, vector<8x1xf32>
    %4 = vector.broadcast %3 : vector<8x1xf32> to vector<8x1024xf32>
    %5 = arith.addf %2, %4 : vector<8x1024xf32>
    %c0_5 = arith.constant 0 : index
    %c0_6 = arith.constant 0 : index
    %6 = vector.load %arg4[%c0_5, %c0_6] : memref<8x1024xf32, #tpu.memory_space<vmem>>, vector<8x1024xf32>
    tpu.vector_store %arg4[%c0_5, %c0_6], %5 {strides = array<i32>} : memref<8x1024xf32, #tpu.memory_space<vmem>>, vector<8x1024xf32>,
    return
  }
  func.func @transform_0(%arg0: i32) -> (i32, i32) {
    %c0_i32 = arith.constant 0 : i32
    %c0_i32_0 = arith.constant 0 : i32
    %c0_i32_1 = arith.constant 0 : i32
    return %c0_i32, %c0_i32_0 : i32, i32
  }
  func.func @transform_1(%arg0: i32) -> (i32, i32) {
    %c0_i32 = arith.constant 0 : i32
    %c0_i32_0 = arith.constant 0 : i32
    %c0_i32_1 = arith.constant 0 : i32
    return %c0_i32, %c0_i32_0 : i32, i32
  }
  func.func @transform_2(%arg0: i32) -> (i32, i32) {
    %c0_i32 = arith.constant 0 : i32
    %c0_i32_0 = arith.constant 0 : i32
    %c0_i32_1 = arith.constant 0 : i32
    return %c0_i32, %c0_i32_0 : i32, i32
  }
  func.func @transform_3(%arg0: i32) -> (i32, i32) {
    %c0_i32 = arith.constant 0 : i32
    %c0_i32_0 = arith.constant 0 : i32
    %c0_i32_1 = arith.constant 0 : i32
    return %c0_i32, %c0_i32_0 : i32, i32
  }
}

module attributes {stable_mosaic.version = 11 : i64} {
  func.func @_head_kernel(%arg0: i32, %arg1: memref<2x4096xf32, #tpu.memory_space<vmem>>, %arg2: memref<4096x32xf32, #tpu.memory_space<vmem>>, %arg3: memref<1x32xf32, #tpu.memory_space<vmem>>, %arg4: memref<32x128xf32, #tpu.memory_space<vmem>>, %arg5: memref<1x128xf32, #tpu.memory_space<vmem>>, %arg6: memref<2x128xf32, #tpu.memory_space<vmem>>) attributes {dimension_semantics = [#tpu.dimension_semantics<arbitrary>], iteration_bounds = array<i64: 1>, scalar_prefetch = 0 : i64, scratch_operands = 0 : i64, tpu.core_type = #tpu.core_type<tc>, window_params = [{pipeline_mode = #tpu.pipeline_mode<synchronous>, transform_indices = @transform_0, window_bounds = array<i64: 2, 4096>}, {pipeline_mode = #tpu.pipeline_mode<synchronous>, transform_indices = @transform_1, window_bounds = array<i64: 4096, 32>}, {pipeline_mode = #tpu.pipeline_mode<synchronous>, transform_indices = @transform_2, window_bounds = array<i64: 1, 32>}, {pipeline_mode = #tpu.pipeline_mode<synchronous>, transform_indices = @transform_3, window_bounds = array<i64: 32, 128>}, {pipeline_mode = #tpu.pipeline_mode<synchronous>, transform_indices = @transform_4, window_bounds = array<i64: 1, 128>}, {pipeline_mode = #tpu.pipeline_mode<synchronous>, transform_indices = @transform_5, window_bounds = array<i64: 2, 128>}]} {
    %c0 = arith.constant 0 : index
    %c0_0 = arith.constant 0 : index
    %0 = vector.load %arg1[%c0, %c0_0] : memref<2x4096xf32, #tpu.memory_space<vmem>>, vector<2x4096xf32>
    %c0_1 = arith.constant 0 : index
    %c0_2 = arith.constant 0 : index
    %1 = vector.load %arg2[%c0_1, %c0_2] : memref<4096x32xf32, #tpu.memory_space<vmem>>, vector<4096x32xf32>
    %cst = arith.constant dense<0.000000e+00> : vector<2x32xf32>
    %2 = tpu.matmul %0, %1, %cst {dimension_numbers = #tpu.dot_dimension_numbers<[1], [0], [0], [1], [0, 0, 1, 1], [], []>} : vector<2x4096xf32>, vector<4096x32xf32>, vector<2x32xf32> -> vector<2x32xf32>
    %c0_3 = arith.constant 0 : index
    %c0_4 = arith.constant 0 : index
    %3 = vector.load %arg3[%c0_3, %c0_4] : memref<1x32xf32, #tpu.memory_space<vmem>>, vector<1x32xf32>
    %4 = vector.broadcast %3 : vector<1x32xf32> to vector<2x32xf32>
    %5 = arith.addf %2, %4 : vector<2x32xf32>
    %cst_5 = arith.constant 0.000000e+00 : f32
    %6 = vector.broadcast %cst_5 : f32 to vector<2x32xf32>
    %7 = arith.cmpf oge, %5, %6 : vector<2x32xf32>
    %cst_6 = arith.constant 0.00999999977 : f32
    %8 = vector.broadcast %cst_6 : f32 to vector<2x32xf32>
    %9 = arith.mulf %8, %5 : vector<2x32xf32>
    %10 = arith.select %7, %5, %9 : vector<2x32xi1>, vector<2x32xf32>
    %c0_7 = arith.constant 0 : index
    %c0_8 = arith.constant 0 : index
    %11 = vector.load %arg4[%c0_7, %c0_8] : memref<32x128xf32, #tpu.memory_space<vmem>>, vector<32x128xf32>
    %cst_9 = arith.constant dense<0.000000e+00> : vector<2x128xf32>
    %12 = tpu.matmul %10, %11, %cst_9 {dimension_numbers = #tpu.dot_dimension_numbers<[1], [0], [0], [1], [0, 0, 1, 1], [], []>} : vector<2x32xf32>, vector<32x128xf32>, vector<2x128xf32> -> vector<2x128xf32>
    %c0_10 = arith.constant 0 : index
    %c0_11 = arith.constant 0 : index
    %13 = vector.load %arg5[%c0_10, %c0_11] : memref<1x128xf32, #tpu.memory_space<vmem>>, vector<1x128xf32>
    %14 = vector.broadcast %13 : vector<1x128xf32> to vector<2x128xf32>
    %15 = arith.addf %12, %14 : vector<2x128xf32>
    %c0_12 = arith.constant 0 : index
    %c0_13 = arith.constant 0 : index
    %16 = vector.load %arg6[%c0_12, %c0_13] : memref<2x128xf32, #tpu.memory_space<vmem>>, vector<2x128xf32>
    tpu.vector_store %arg6[%c0_12, %c0_13], %15 {strides = array<i32>} : memref<2x128xf32, #tpu.memory_space<vmem>>, vector<2x128xf32>,
    return
  }
  func.func @transform_0(%arg0: i32) -> (i32, i32) {
    %c0_i32 = arith.constant 0 : i32
    %c0_i32_0 = arith.constant 0 : i32
    %c0_i32_1 = arith.constant 0 : i32
    return %c0_i32, %c0_i32_0 : i32, i32
  }
  func.func @transform_1(%arg0: i32) -> (i32, i32) {
    %c0_i32 = arith.constant 0 : i32
    %c0_i32_0 = arith.constant 0 : i32
    %c0_i32_1 = arith.constant 0 : i32
    return %c0_i32, %c0_i32_0 : i32, i32
  }
  func.func @transform_2(%arg0: i32) -> (i32, i32) {
    %c0_i32 = arith.constant 0 : i32
    %c0_i32_0 = arith.constant 0 : i32
    %c0_i32_1 = arith.constant 0 : i32
    return %c0_i32, %c0_i32_0 : i32, i32
  }
  func.func @transform_3(%arg0: i32) -> (i32, i32) {
    %c0_i32 = arith.constant 0 : i32
    %c0_i32_0 = arith.constant 0 : i32
    %c0_i32_1 = arith.constant 0 : i32
    return %c0_i32, %c0_i32_0 : i32, i32
  }
  func.func @transform_4(%arg0: i32) -> (i32, i32) {
    %c0_i32 = arith.constant 0 : i32
    %c0_i32_0 = arith.constant 0 : i32
    %c0_i32_1 = arith.constant 0 : i32
    return %c0_i32, %c0_i32_0 : i32, i32
  }
  func.func @transform_5(%arg0: i32) -> (i32, i32) {
    %c0_i32 = arith.constant 0 : i32
    %c0_i32_0 = arith.constant 0 : i32
    %c0_i32_1 = arith.constant 0 : i32
    return %c0_i32, %c0_i32_0 : i32, i32
  }
}

</mosaic_0001>

<bundles_post_ra>
// kernel: discriminator_forward.4
= control target key start
LH: loop header
LB: loop body
LE: loop exit
PB: predicated region body
PF: predicated region fallthrough
CT: control target
= control target key end

     0   :  { %vm41_vm0 = vcmask 1043456   ;;  %vm402_vm1 = vmmov 1   ;;  %v403_v3 = vmov 0.0   ;;  %v404_v8 = vmov 0   ;;  %s527_s1 = inlined_call_operand.vmem [shape: f32[12,1024], index: 1, kind: input, shape index: {}]   ;;  %s528_s0 = inlined_call_operand.vmem [shape: f32[8,12], index: 0, kind: input, shape index: {}]   ;;  %s529_s2 = inlined_call_operand.vmem [shape: f32[8,1], index: 2, kind: input, shape index: {}]   ;;  %s530_s3 = inlined_call_operand.vmem [shape: f32[8,1024], index: 3, kind: output, shape index: {}]  }
   0x1   :  { %v16_v0 = vld [vmem:[%s527_s1 + $0x8] sm:$0xff]  ;;  %vm431_vm2 = vmpackc.low %vm41_vm0, %vm402_vm1  ;;  %130 = vmatprep.mubr.f32.mxu0 %v403_v3  ;;  %201 = vmatprep.mubr.f32.mxu1 %v403_v3  ;;  %v18_v5 = vld [vmem:[%s527_s1 + $0x18] sm:$0xff]  ;;  %vm37_vm3 = vcmask 97280  }
   0x2   :  { %v24_v1 = vld [vmem:[%s527_s1 + $0x48] sm:$0xf]  ;;  %v26_v6 = vld [vmem:[%s527_s1 + $0x58] sm:$0xf]  ;;  %v15_v7 = vld [vmem:[%s527_s1] sm:$0xff]  ;;  %401 = vset.pattern.permute.xlu0 %v404_v8 }
   0x3   :  { %v374_v4 = vpack.c.bf16 %v24_v1, %v16_v0  ;;  %v380_v9 = vpack.c.bf16 %v26_v6, %v18_v5  ;;  %v23_v10 = vld [vmem:[%s527_s1 + $0x40] sm:$0xf]  ;;  %v17_v11 = vld [vmem:[%s527_s1 + $0x10] sm:$0xff]  ;;  %v20_v16 = vld [vmem:[%s527_s1 + $0x28] sm:$0xff] }
   0x4   :  { %v25_v12 = vld [vmem:[%s527_s1 + $0x50] sm:$0xf]  ;;  %v377_v13 = vpack.c.bf16 %v23_v10, %v15_v7  ;;  %v14_v15 = vld [vmem:[%s528_s0] sm:$0xff]  ;;  %v28_v17 = vld [vmem:[%s527_s1 + $0x68] sm:$0xf] }
   0x5   :  { %376 = vmatprep.subr.msk.bf16.mxu0 %vm431_vm2, %v374_v4  ;;  %v383_v14 = vpack.c.bf16 %v25_v12, %v17_v11  ;;  %382 = vmatprep.subr.msk.bf16.mxu1 %vm431_vm2, %v380_v9  ;;  %v386_v18 = vpack.c.bf16 %v28_v17, %v20_v16  ;;  %v22_v19 = vld [vmem:[%s527_s1 + $0x38] sm:$0xff]  ;;  %v19_v21 = vld [vmem:[%s527_s1 + $0x20] sm:$0xff]  ;;  %v21_v24 = vld [vmem:[%s527_s1 + $0x30] sm:$0xff] }
   0x6   :  { %v30_v20 = vld [vmem:[%s527_s1 + $0x78] sm:$0xf]  ;;  %379 = vmatpush1.bf16.msk.msra.mxu0 %vm431_vm2, %v377_v13  ;;  %v27_v23 = vld [vmem:[%s527_s1 + $0x60] sm:$0xf]  ;;  %v29_v25 = vld [vmem:[%s527_s1 + $0x70] sm:$0xf] }
   0x7   :  { %385 = vmatpush1.bf16.msk.msra.mxu1 %vm431_vm2, %v383_v14  ;;  %v392_v22 = vpack.c.bf16 %v30_v20, %v22_v19  ;;  %388 = vmatprep.subr.msk.bf16.mxu0 %vm431_vm2, %v386_v18  ;;  %v389_v26 = vpack.c.bf16 %v27_v23, %v19_v21  ;;  %v395_v27 = vpack.c.bf16 %v29_v25, %v21_v24  ;;  %v31_v28 = vld [vmem:[%s529_s2] sm:$0xff] }
   0x8   :  { %34 = vperm.xlu0 %401, %v31_v28  }
   0x9   :  { %394 = vmatprep.subr.msk.bf16.mxu1 %vm431_vm2, %v392_v22  ;;  %364 = vmatmul.mubr.msk.f32.vlgmr.msra.gmra.mrb[0].mxu0 %vm37_vm3, %v14_v15 }
   0xa   :  { %367 = vmatmul.mubr.msk.f32.vlgmr.msra.gmra.mrb[0].mxu1 %vm37_vm3, %v14_v15  ;;  %391 = vmatpush1.bf16.msk.msra.mxu0 %vm431_vm2, %v389_v26 }
   0xb   :  { %397 = vmatpush1.bf16.msk.msra.mxu1 %vm431_vm2, %v395_v27  ;;  %272 = vmatprep.mubr.f32.mxu0 %v403_v3 }
   0xc   :  { %343 = vmatprep.mubr.f32.mxu1 %v403_v3 }
   0xd   :  { %370 = vmatmul.mubr.msk.f32.vlgmr.msra.gmra.mrb[2].mxu0 %vm37_vm3, %v14_v15 }
   0xe   :  { %373 = vmatmul.mubr.msk.f32.vlgmr.msra.gmra.mrb[2].mxu1 %vm37_vm3, %v14_v15 }
  0x87   :  { %v35_v29 = vpop.permute.xlu0 %34 }
  0xdc   :  { %v132_v30 = vpop.f32.mrb[0].mxu0 }
  0xdd   :  { %v203_v31 = vpop.f32.mrb[0].mxu1  ;;  %v133_v32 = vadd.f32 %v132_v30, %v35_v29  ;;  %v134_v34 = vpop.f32.mrb[1].mxu0 }
  0xde   :  { %v204_v33 = vadd.f32 %v203_v31, %v35_v29  ;;  %v205_v35 = vpop.f32.mrb[1].mxu1  ;;  %v135_v36 = vadd.f32 %v134_v34, %v35_v29 }
  0xdf   :  { %v206_v37 = vadd.f32 %v205_v35, %v35_v29  ;;  %350 = vst [vmem:[%s530_s3] sm:$0xff] %v133_v32 }
  0xe0   :  { %352 = vst [vmem:[%s530_s3 + $0x10] sm:$0xff] %v204_v33  ;;  %351 = vst [vmem:[%s530_s3 + $0x8] sm:$0xff] %v135_v36  ;;  %v274_v38 = vpop.f32.mrb[2].mxu0 }
  0xe1   :  { %353 = vst [vmem:[%s530_s3 + $0x18] sm:$0xff] %v206_v37  ;;  %v345_v39 = vpop.f32.mrb[2].mxu1  ;;  %v275_v40 = vadd.f32 %v274_v38, %v35_v29  ;;  %v276_v42 = vpop.f32.mrb[3].mxu0 }
  0xe2   :  { %v346_v41 = vadd.f32 %v345_v39, %v35_v29  ;;  %v347_v43 = vpop.f32.mrb[3].mxu1  ;;  %v277_v44 = vadd.f32 %v276_v42, %v35_v29 }
  0xe3   :  { %v348_v45 = vadd.f32 %v347_v43, %v35_v29  ;;  %354 = vst [vmem:[%s530_s3 + $0x20] sm:$0xff] %v275_v40 }
  0xe4   :  { %356 = vst [vmem:[%s530_s3 + $0x30] sm:$0xff] %v346_v41  ;;  %355 = vst [vmem:[%s530_s3 + $0x28] sm:$0xff] %v277_v44 }
  0xe5   :  { %357 = vst [vmem:[%s530_s3 + $0x38] sm:$0xff] %v348_v45 }

// kernel: discriminator_forward.5
= control target key start
LH: loop header
LB: loop body
LE: loop exit
PB: predicated region body
PF: predicated region fallthrough
CT: control target
= control target key end

     0   :  { %v368_v3 = vmov 0.0   ;;  %v369_v8 = vmov 0   ;;  %vm45_vm0 = vcmask 195584   ;;  %s496_s1 = inlined_call_operand.vmem [shape: f32[24,1024], index: 1, kind: input, shape index: {}]   ;;  %s497_s0 = inlined_call_operand.vmem [shape: f32[8,24], index: 0, kind: input, shape index: {}]   ;;  %s498_s2 = inlined_call_operand.vmem [shape: f32[8,1], index: 2, kind: input, shape index: {}]   ;;  %s499_s3 = inlined_call_operand.vmem [shape: f32[8,1024], index: 3, kind: output, shape index: {}]  }
   0x1   :  { %v16_v0 = vld [vmem:[%s496_s1 + $0x8] sm:$0xff]  ;;  %v18_v2 = vld [vmem:[%s496_s1 + $0x18] sm:$0xff]  ;;  %113 = vmatprep.mubr.f32.mxu0 %v368_v3  ;;  %184 = vmatprep.mubr.f32.mxu1 %v368_v3  ;;  %v15_v6 = vld [vmem:[%s496_s1] sm:$0xff] }
   0x2   :  { %v24_v1 = vld [vmem:[%s496_s1 + $0x48] sm:$0xff]  ;;  %v26_v5 = vld [vmem:[%s496_s1 + $0x58] sm:$0xff]  ;;  %v23_v7 = vld [vmem:[%s496_s1 + $0x40] sm:$0xff]  ;;  %367 = vset.pattern.permute.xlu0 %v369_v8 }
   0x3   :  { %v349_v4 = vpack.c.bf16 %v24_v1, %v16_v0  ;;  %v353_v9 = vpack.c.bf16 %v26_v5, %v18_v2  ;;  %v351_v10 = vpack.c.bf16 %v23_v7, %v15_v6  ;;  %v17_v11 = vld [vmem:[%s496_s1 + $0x10] sm:$0xff]  ;;  %v32_v13 = vld [vmem:[%s496_s1 + $0x88] sm:$0xff]  ;;  %v34_v15 = vld [vmem:[%s496_s1 + $0x98] sm:$0xff] }
   0x4   :  { %v25_v12 = vld [vmem:[%s496_s1 + $0x50] sm:$0xff]  ;;  %v31_v16 = vld [vmem:[%s496_s1 + $0x80] sm:$0xff]  ;;  %v20_v19 = vld [vmem:[%s496_s1 + $0x28] sm:$0xff] }
   0x5   :  { %350 = vmatprep.subr.bf16.mxu0 %v349_v4  ;;  %v355_v14 = vpack.c.bf16 %v25_v12, %v17_v11  ;;  %354 = vmatprep.subr.bf16.mxu1 %v353_v9  ;;  %v33_v17 = vld [vmem:[%s496_s1 + $0x90] sm:$0xff]  ;;  %v14_v18 = vld [vmem:[%s497_s0] sm:$0xff]  ;;  %v28_v20 = vld [vmem:[%s496_s1 + $0x68] sm:$0xff] }
   0x6   :  { %352 = vmatpush1.bf16.msra.mxu0 %v351_v10  ;;  %v22_v21 = vld [vmem:[%s496_s1 + $0x38] sm:$0xff]  ;;  %v19_v23 = vld [vmem:[%s496_s1 + $0x20] sm:$0xff]  ;;  %v357_v24 = vpack.c.bf16 %v28_v20, %v20_v19  ;;  %v21_v26 = vld [vmem:[%s496_s1 + $0x30] sm:$0xff] }
   0x7   :  { %356 = vmatpush1.bf16.msra.mxu1 %v355_v14  ;;  %53 = vmatprep.subr.mxu0 %v32_v13  ;;  %v30_v22 = vld [vmem:[%s496_s1 + $0x78] sm:$0xff]  ;;  %v27_v25 = vld [vmem:[%s496_s1 + $0x60] sm:$0xff]  ;;  %v29_v27 = vld [vmem:[%s496_s1 + $0x70] sm:$0xff] }
   0x8   :  { %124 = vmatprep.subr.mxu1 %v34_v15  ;;  %v361_v28 = vpack.c.bf16 %v30_v22, %v22_v21  ;;  %v359_v29 = vpack.c.bf16 %v27_v25, %v19_v23  ;;  %v363_v30 = vpack.c.bf16 %v29_v27, %v21_v26  ;;  %v36_v31 = vld [vmem:[%s496_s1 + $0xa8] sm:$0xff]  ;;  %v38_v32 = vld [vmem:[%s496_s1 + $0xb8] sm:$0xff]  ;;  %v39_v33 = vld [vmem:[%s498_s2] sm:$0xff] }
   0x9   :  { %v35_v34 = vld [vmem:[%s496_s1 + $0xa0] sm:$0xff]  ;;  %v37_v35 = vld [vmem:[%s496_s1 + $0xb0] sm:$0xff]  ;;  %42 = vperm.xlu0 %367, %v39_v33  }
   0xa   :  { %54 = vmatpush1.msra.mxu0 %v31_v16 }
   0xb   :  { %125 = vmatpush1.msra.mxu1 %v33_v17  ;;  %345 = vmatmul.mubr.msk.f32.vlgmr.msra.gmra.mrb[0].mxu0 %vm45_vm0, %v14_v18 }
   0xc   :  { %346 = vmatmul.mubr.msk.f32.vlgmr.msra.gmra.mrb[0].mxu1 %vm45_vm0, %v14_v18  ;;  %358 = vmatprep.subr.bf16.mxu0 %v357_v24 }
   0xd   :  { %362 = vmatprep.subr.bf16.mxu1 %v361_v28  ;;  %360 = vmatpush1.bf16.msra.mxu0 %v359_v29 }
   0xe   :  { %364 = vmatpush1.bf16.msra.mxu1 %v363_v30  ;;  %195 = vmatprep.subr.mxu0 %v36_v31 }
   0xf   :  { %266 = vmatprep.subr.mxu1 %v38_v32  ;;  %255 = vmatprep.mubr.f32.mxu0 %v368_v3 }
  0x10   :  { %326 = vmatprep.mubr.f32.mxu1 %v368_v3 }
  0x11   :  { %196 = vmatpush1.msra.mxu0 %v35_v34 }
  0x12   :  { %267 = vmatpush1.msra.mxu1 %v37_v35  ;;  %347 = vmatmul.mubr.msk.f32.vlgmr.msra.gmra.mrb[2].mxu0 %vm45_vm0, %v14_v18 }
  0x13   :  { %348 = vmatmul.mubr.msk.f32.vlgmr.msra.gmra.mrb[2].mxu1 %vm45_vm0, %v14_v18 }
  0x88   :  { %v43_v36 = vpop.permute.xlu0 %42 }
  0xde   :  { %v115_v37 = vpop.f32.mrb[0].mxu0 }
  0xdf   :  { %v186_v38 = vpop.f32.mrb[0].mxu1  ;;  %v116_v39 = vadd.f32 %v115_v37, %v43_v36  ;;  %v117_v40 = vpop.f32.mrb[1].mxu0 }
  0xe0   :  { %v187_v41 = vadd.f32 %v186_v38, %v43_v36  ;;  %v118_v42 = vadd.f32 %v117_v40, %v43_v36  ;;  %v188_v43 = vpop.f32.mrb[1].mxu1 }
  0xe1   :  { %333 = vst [vmem:[%s499_s3] sm:$0xff] %v116_v39  ;;  %v189_v44 = vadd.f32 %v188_v43, %v43_v36 }
  0xe2   :  { %335 = vst [vmem:[%s499_s3 + $0x10] sm:$0xff] %v187_v41  ;;  %334 = vst [vmem:[%s499_s3 + $0x8] sm:$0xff] %v118_v42 }
  0xe3   :  { %336 = vst [vmem:[%s499_s3 + $0x18] sm:$0xff] %v189_v44 }
  0xe5   :  { %v257_v45 = vpop.f32.mrb[2].mxu0 }
  0xe6   :  { %v258_v46 = vadd.f32 %v257_v45, %v43_v36  ;;  %v328_v47 = vpop.f32.mrb[2].mxu1  ;;  %v259_v48 = vpop.f32.mrb[3].mxu0 }
  0xe7   :  { %v329_v49 = vadd.f32 %v328_v47, %v43_v36  ;;  %v260_v50 = vadd.f32 %v259_v48, %v43_v36  ;;  %v330_v51 = vpop.f32.mrb[3].mxu1 }
  0xe8   :  { %337 = vst [vmem:[%s499_s3 + $0x20] sm:$0xff] %v258_v46  ;;  %v331_v52 = vadd.f32 %v330_v51, %v43_v36 }
  0xe9   :  { %339 = vst [vmem:[%s499_s3 + $0x30] sm:$0xff] %v329_v49  ;;  %338 = vst [vmem:[%s499_s3 + $0x28] sm:$0xff] %v260_v50 }
  0xea   :  { %340 = vst [vmem:[%s499_s3 + $0x38] sm:$0xff] %v331_v52 }

// kernel: discriminator_forward.7
= control target key start
LH: loop header
LB: loop body
LE: loop exit
PB: predicated region body
PF: predicated region fallthrough
CT: control target
= control target key end

     0   :  { %v3081_v47 = vmov 1983009808   ;;  %v560_v49 = vlaneseq  ;;  %s4794_s0 = inlined_call_operand.vmem [shape: f32[2,4096], index: 0, kind: input, shape index: {}]   ;;  %s4795_s1 = inlined_call_operand.vmem [shape: f32[4096,32], index: 1, kind: input, shape index: {}]   ;;  %s4796_s2 = inlined_call_operand.vmem [shape: f32[1,32], index: 2, kind: input, shape index: {}]   ;;  %s4797_s3 = inlined_call_operand.vmem [shape: f32[32,128], index: 3, kind: input, shape index: {}]   ;;  %s4798_s4 = inlined_call_operand.vmem [shape: f32[1,128], index: 4, kind: input, shape index: {}]   ;;  %s4799_s5 = inlined_call_operand.hbm [shape: f32[2,128], index: 5, kind: output, shape index: {}]  }
   0x1   :  { %v45_v0 = vld [vmem:[%s4795_s1 + $0x80] sm:$0xff]  ;;  %v46_v1 = vld [vmem:[%s4795_s1 + $0x88] sm:$0xff]  ;;  %v47_v11 = vld [vmem:[%s4795_s1 + $0x90] sm:$0xff]  ;;  %v558_v48 = vunpack.c.l.s4 %v3081_v47 }
   0x2   :  { %v29_v2 = vld [vmem:[%s4795_s1] sm:$0xff]  ;;  %v2526_v3 = vpack.c.bf16 %v46_v1, %v45_v0  ;;  %v30_v4 = vld [vmem:[%s4795_s1 + $0x8] sm:$0xff]  ;;  %v48_v13 = vld [vmem:[%s4795_s1 + $0x98] sm:$0xff]  ;;  %v561_v0 = vshrl.u32 %v560_v49, 7 }
   0x3   :  { %v77_v5 = vld [vmem:[%s4795_s1 + $0x180] sm:$0xff]  ;;  %v78_v6 = vld [vmem:[%s4795_s1 + $0x188] sm:$0xff]  ;;  %v2528_v7 = vpack.c.bf16 %v30_v4, %v29_v2  ;;  %v31_v14 = vld [vmem:[%s4795_s1 + $0x10] sm:$0xff]  ;;  %v2530_v16 = vpack.c.bf16 %v48_v13, %v47_v11  ;;  %v559_v63 = vunpack.c.0.s8 %v558_v48 }
   0x4   :  { %v2558_v8 = vpack.c.bf16 %v78_v6, %v77_v5  ;;  %v61_v9 = vld [vmem:[%s4795_s1 + $0x100] sm:$0xff]  ;;  %v62_v10 = vld [vmem:[%s4795_s1 + $0x108] sm:$0xff]  ;;  %2527 = vmatprep.subr.bf16.mxu0 %v2526_v3  ;;  %v32_v15 = vld [vmem:[%s4795_s1 + $0x18] sm:$0xff] }
   0x5   :  { %v2560_v12 = vpack.c.bf16 %v62_v10, %v61_v9  ;;  %2529 = vmatpush3.bf16.msra.mxu0 %v2528_v7  ;;  %v2532_v17 = vpack.c.bf16 %v32_v15, %v31_v14  ;;  %v79_v18 = vld [vmem:[%s4795_s1 + $0x190] sm:$0xff]  ;;  %v80_v19 = vld [vmem:[%s4795_s1 + $0x198] sm:$0xff]  ;;  %v49_v23 = vld [vmem:[%s4795_s1 + $0xa0] sm:$0xff]  ;;  %v3266_v13 = vsub.s32 %v559_v63, %v561_v0 }
   0x6   :  { %2559 = vmatprep.subr.bf16.mxu1 %v2558_v8  ;;  %v63_v20 = vld [vmem:[%s4795_s1 + $0x110] sm:$0xff]  ;;  %v2562_v21 = vpack.c.bf16 %v80_v19, %v79_v18  ;;  %v64_v22 = vld [vmem:[%s4795_s1 + $0x118] sm:$0xff]  ;;  %v50_v24 = vld [vmem:[%s4795_s1 + $0xa8] sm:$0xff]  ;;  %2531 = vmatprep.subr.bf16.mxu0 %v2530_v16 }
   0x7   :  { %2561 = vmatpush3.bf16.msra.mxu1 %v2560_v12  ;;  %v2564_v25 = vpack.c.bf16 %v64_v22, %v63_v20  ;;  %v2534_v26 = vpack.c.bf16 %v50_v24, %v49_v23  ;;  %v33_v27 = vld [vmem:[%s4795_s1 + $0x20] sm:$0xff]  ;;  %v34_v28 = vld [vmem:[%s4795_s1 + $0x28] sm:$0xff]  ;;  %v51_v35 = vld [vmem:[%s4795_s1 + $0xb0] sm:$0xff] }
   0x8   :  { %v81_v29 = vld [vmem:[%s4795_s1 + $0x1a0] sm:$0xff]  ;;  %2563 = vmatprep.subr.bf16.mxu1 %v2562_v21  ;;  %v82_v30 = vld [vmem:[%s4795_s1 + $0x1a8] sm:$0xff]  ;;  %v2536_v33 = vpack.c.bf16 %v34_v28, %v33_v27  ;;  %v52_v36 = vld [vmem:[%s4795_s1 + $0xb8] sm:$0xff] }
   0x9   :  { %v65_v31 = vld [vmem:[%s4795_s1 + $0x120] sm:$0xff]  ;;  %v66_v32 = vld [vmem:[%s4795_s1 + $0x128] sm:$0xff]  ;;  %2533 = vmatpush3.bf16.msra.mxu0 %v2532_v17  ;;  %v2566_v34 = vpack.c.bf16 %v82_v30, %v81_v29  ;;  %v35_v37 = vld [vmem:[%s4795_s1 + $0x30] sm:$0xff]  ;;  %v2538_v39 = vpack.c.bf16 %v52_v36, %v51_v35 }
   0xa   :  { %2535 = vmatprep.subr.bf16.mxu0 %v2534_v26  ;;  %v2568_v38 = vpack.c.bf16 %v66_v32, %v65_v31  ;;  %v36_v40 = vld [vmem:[%s4795_s1 + $0x38] sm:$0xff]  ;;  %v83_v41 = vld [vmem:[%s4795_s1 + $0x1b0] sm:$0xff]  ;;  %v53_v46 = vld [vmem:[%s4795_s1 + $0xc0] sm:$0xff] }
   0xb   :  { %2565 = vmatpush3.bf16.msra.mxu1 %v2564_v25  ;;  %v84_v42 = vld [vmem:[%s4795_s1 + $0x1b8] sm:$0xff]  ;;  %v67_v44 = vld [vmem:[%s4795_s1 + $0x130] sm:$0xff]  ;;  %v54_v50 = vld [vmem:[%s4795_s1 + $0xc8] sm:$0xff]  ;;  %v2540_v51 = vpack.c.bf16 %v36_v40, %v35_v37 }
   0xc   :  { %2567 = vmatprep.subr.bf16.mxu1 %v2566_v34  ;;  %v2570_v43 = vpack.c.bf16 %v84_v42, %v83_v41  ;;  %v68_v45 = vld [vmem:[%s4795_s1 + $0x138] sm:$0xff]  ;;  %v85_v52 = vld [vmem:[%s4795_s1 + $0x1c0] sm:$0xff]  ;;  %v86_v53 = vld [vmem:[%s4795_s1 + $0x1c8] sm:$0xff]  ;;  %v2542_v55 = vpack.c.bf16 %v54_v50, %v53_v46 }
   0xd   :  { %2537 = vmatpush3.bf16.msra.mxu0 %v2536_v33  ;;  %v2572_v54 = vpack.c.bf16 %v68_v45, %v67_v44  ;;  %v37_v56 = vld [vmem:[%s4795_s1 + $0x40] sm:$0xff]  ;;  %v38_v57 = vld [vmem:[%s4795_s1 + $0x48] sm:$0xff]  ;;  %v2574_v59 = vpack.c.bf16 %v86_v53, %v85_v52  ;;  %v55_v61 = vld [vmem:[%s4795_s1 + $0xd0] sm:$0xff] }
   0xe   :  { %2539 = vmatprep.subr.bf16.mxu0 %v2538_v39  ;;  %v69_v58 = vld [vmem:[%s4795_s1 + $0x140] sm:$0xff]  ;;  %v70_v60 = vld [vmem:[%s4795_s1 + $0x148] sm:$0xff]  ;;  %v56_v62 = vld [vmem:[%s4795_s1 + $0xd8] sm:$0xff]  ;;  %v2544_v3 = vpack.c.bf16 %v38_v57, %v37_v56 }
   0xf   :  { %2569 = vmatpush3.bf16.msra.mxu1 %v2568_v38  ;;  %v87_v1 = vld [vmem:[%s4795_s1 + $0x1d0] sm:$0xff]  ;;  %v88_v2 = vld [vmem:[%s4795_s1 + $0x1d8] sm:$0xff]  ;;  %v2576_v4 = vpack.c.bf16 %v70_v60, %v69_v58  ;;  %v2546_v5 = vpack.c.bf16 %v56_v62, %v55_v61  ;;  %v57_v11 = vld [vmem:[%s4795_s1 + $0xe0] sm:$0xff] }
  0x10   :  { %2571 = vmatprep.subr.bf16.mxu1 %v2570_v43  ;;  %v39_v6 = vld [vmem:[%s4795_s1 + $0x50] sm:$0xff]  ;;  %v40_v7 = vld [vmem:[%s4795_s1 + $0x58] sm:$0xff]  ;;  %v2578_v9 = vpack.c.bf16 %v88_v2, %v87_v1  ;;  %v58_v12 = vld [vmem:[%s4795_s1 + $0xe8] sm:$0xff] }
  0x11   :  { %2541 = vmatpush3.bf16.msra.mxu0 %v2540_v51  ;;  %v71_v8 = vld [vmem:[%s4795_s1 + $0x150] sm:$0xff]  ;;  %v72_v10 = vld [vmem:[%s4795_s1 + $0x158] sm:$0xff]  ;;  %v89_v14 = vld [vmem:[%s4795_s1 + $0x1e0] sm:$0xff]  ;;  %v2548_v16 = vpack.c.bf16 %v40_v7, %v39_v6  ;;  %v2550_v19 = vpack.c.bf16 %v58_v12, %v57_v11 }
  0x12   :  { %2543 = vmatprep.subr.bf16.mxu0 %v2542_v55  ;;  %v90_v15 = vld [vmem:[%s4795_s1 + $0x1e8] sm:$0xff]  ;;  %v41_v17 = vld [vmem:[%s4795_s1 + $0x60] sm:$0xff]  ;;  %v2580_v18 = vpack.c.bf16 %v72_v10, %v71_v8  ;;  %v59_v25 = vld [vmem:[%s4795_s1 + $0xf0] sm:$0xff] }
  0x13   :  { %2573 = vmatpush3.bf16.msra.mxu1 %v2572_v54  ;;  %v42_v20 = vld [vmem:[%s4795_s1 + $0x68] sm:$0xff]  ;;  %v73_v21 = vld [vmem:[%s4795_s1 + $0x160] sm:$0xff]  ;;  %v2582_v23 = vpack.c.bf16 %v90_v15, %v89_v14  ;;  %v60_v26 = vld [vmem:[%s4795_s1 + $0xf8] sm:$0xff] }
  0x14   :  { %2575 = vmatprep.subr.bf16.mxu1 %v2574_v59  ;;  %v21_v22 = vld [vmem:[%s4794_s0] sm:$0xff]  ;;  %v74_v24 = vld [vmem:[%s4795_s1 + $0x168] sm:$0xff]  ;;  %v91_v29 = vld [vmem:[%s4795_s1 + $0x1f0] sm:$0xff]  ;;  %v2552_v31 = vpack.c.bf16 %v42_v20, %v41_v17  ;;  %v2554_v35 = vpack.c.bf16 %v60_v26, %v59_v25 }
  0x15   :  { %2545 = vmatpush3.bf16.msra.mxu0 %v2544_v3  ;;  %v563_v27 = vrot.slane %v21_v22, %v3266_v13  ;;  %v556_v28 = vcombine.high %v21_v22, %v21_v22  ;;  %v92_v30 = vld [vmem:[%s4795_s1 + $0x1f8] sm:$0xff]  ;;  %v2584_v34 = vpack.c.bf16 %v74_v24, %v73_v21  ;;  %v43_v36 = vld [vmem:[%s4795_s1 + $0x70] sm:$0xff]  ;;  %v109_v41 = vld [vmem:[%s4795_s1 + $0x280] sm:$0xff] }
  0x16   :  { %2547 = vmatprep.subr.bf16.mxu0 %v2546_v5  ;;  %v44_v37 = vld [vmem:[%s4795_s1 + $0x78] sm:$0xff]  ;;  %v75_v38 = vld [vmem:[%s4795_s1 + $0x170] sm:$0xff]  ;;  %v2586_v39 = vpack.c.bf16 %v92_v30, %v91_v29  ;;  %v110_v42 = vld [vmem:[%s4795_s1 + $0x288] sm:$0xff] }
  0x17   :  { %2577 = vmatpush3.bf16.msra.mxu1 %v2576_v4  ;;  %v571_v32 = vcombine.high %v563_v27, %v563_v27  ;;  %v570_v33 = vrot.slane %v556_v28, %v3266_v13  ;;  %v76_v40 = vld [vmem:[%s4795_s1 + $0x178] sm:$0xff]  ;;  %v141_v44 = vld [vmem:[%s4795_s1 + $0x380] sm:$0xff]  ;;  %v142_v45 = vld [vmem:[%s4795_s1 + $0x388] sm:$0xff]  ;;  %v2556_v46 = vpack.c.bf16 %v44_v37, %v43_v36  ;;  %v2590_v48 = vpack.c.bf16 %v110_v42, %v109_v41 }
  0x18   :  { %2579 = vmatprep.subr.bf16.mxu1 %v2578_v9  ;;  %v2588_v47 = vpack.c.bf16 %v76_v40, %v75_v38  ;;  %v93_v49 = vld [vmem:[%s4795_s1 + $0x200] sm:$0xff]  ;;  %v94_v50 = vld [vmem:[%s4795_s1 + $0x208] sm:$0xff]  ;;  %v2622_v52 = vpack.c.bf16 %v142_v45, %v141_v44  ;;  %v111_v54 = vld [vmem:[%s4795_s1 + $0x290] sm:$0xff] }
  0x19   :  { %2549 = vmatpush3.bf16.msra.mxu0 %v2548_v16  ;;  %788 = vmatprep.mubr.f32.mxu0 %v571_v32  ;;  %v572_v43 = vcombine.high %v570_v33, %v570_v33  ;;  %v125_v51 = vld [vmem:[%s4795_s1 + $0x300] sm:$0xff]  ;;  %v126_v53 = vld [vmem:[%s4795_s1 + $0x308] sm:$0xff]  ;;  %v112_v55 = vld [vmem:[%s4795_s1 + $0x298] sm:$0xff]  ;;  %v2592_v58 = vpack.c.bf16 %v94_v50, %v93_v49 }
  0x1a   :  { %2551 = vmatprep.subr.bf16.mxu0 %v2550_v19  ;;  %v143_v56 = vld [vmem:[%s4795_s1 + $0x390] sm:$0xff]  ;;  %v144_v57 = vld [vmem:[%s4795_s1 + $0x398] sm:$0xff]  ;;  %v2624_v59 = vpack.c.bf16 %v126_v53, %v125_v51  ;;  %v2594_v60 = vpack.c.bf16 %v112_v55, %v111_v54  ;;  %v113_v2 = vld [vmem:[%s4795_s1 + $0x2a0] sm:$0xff] }
  0x1b   :  { %2581 = vmatpush3.bf16.msra.mxu1 %v2580_v18  ;;  %858 = vmatprep.mubr.f32.mxu1 %v572_v43  ;;  %v95_v61 = vld [vmem:[%s4795_s1 + $0x210] sm:$0xff]  ;;  %v96_v62 = vld [vmem:[%s4795_s1 + $0x218] sm:$0xff]  ;;  %v2626_v0 = vpack.c.bf16 %v144_v57, %v143_v56  ;;  %v114_v3 = vld [vmem:[%s4795_s1 + $0x2a8] sm:$0xff] }
  0x1c   :  { %2583 = vmatprep.subr.bf16.mxu1 %v2582_v23  ;;  %v127_v63 = vld [vmem:[%s4795_s1 + $0x310] sm:$0xff]  ;;  %v128_v1 = vld [vmem:[%s4795_s1 + $0x318] sm:$0xff]  ;;  %v145_v4 = vld [vmem:[%s4795_s1 + $0x3a0] sm:$0xff]  ;;  %v2596_v6 = vpack.c.bf16 %v96_v62, %v95_v61  ;;  %v2598_v8 = vpack.c.bf16 %v114_v3, %v113_v2 }
  0x1d   :  { %2553 = vmatpush3.bf16.msra.mxu0 %v2552_v31  ;;  %v146_v5 = vld [vmem:[%s4795_s1 + $0x3a8] sm:$0xff]  ;;  %v2628_v7 = vpack.c.bf16 %v128_v1, %v127_v63  ;;  %v97_v9 = vld [vmem:[%s4795_s1 + $0x220] sm:$0xff]  ;;  %v115_v15 = vld [vmem:[%s4795_s1 + $0x2b0] sm:$0xff] }
  0x1e   :  { %2555 = vmatprep.subr.bf16.mxu0 %v2554_v35  ;;  %v98_v10 = vld [vmem:[%s4795_s1 + $0x228] sm:$0xff]  ;;  %v129_v11 = vld [vmem:[%s4795_s1 + $0x320] sm:$0xff]  ;;  %v2630_v12 = vpack.c.bf16 %v146_v5, %v145_v4  ;;  %v116_v16 = vld [vmem:[%s4795_s1 + $0x2b8] sm:$0xff] }
  0x1f   :  { %2585 = vmatpush3.bf16.msra.mxu1 %v2584_v34  ;;  %v130_v14 = vld [vmem:[%s4795_s1 + $0x328] sm:$0xff]  ;;  %v147_v17 = vld [vmem:[%s4795_s1 + $0x3b0] sm:$0xff]  ;;  %v148_v18 = vld [vmem:[%s4795_s1 + $0x3b8] sm:$0xff]  ;;  %v2600_v19 = vpack.c.bf16 %v98_v10, %v97_v9  ;;  %v2602_v21 = vpack.c.bf16 %v116_v16, %v115_v15 }
  0x20   :  { %2587 = vmatprep.subr.bf16.mxu1 %v2586_v39  ;;  %v2632_v20 = vpack.c.bf16 %v130_v14, %v129_v11  ;;  %v99_v22 = vld [vmem:[%s4795_s1 + $0x230] sm:$0xff]  ;;  %v100_v23 = vld [vmem:[%s4795_s1 + $0x238] sm:$0xff]  ;;  %v2634_v25 = vpack.c.bf16 %v148_v18, %v147_v17  ;;  %v118_v28 = vld [vmem:[%s4795_s1 + $0x2c8] sm:$0xff] }
  0x21   :  { %2557 = vmatpush3.bf16.msra.mxu0 %v2556_v46  ;;  %v131_v24 = vld [vmem:[%s4795_s1 + $0x330] sm:$0xff]  ;;  %v132_v26 = vld [vmem:[%s4795_s1 + $0x338] sm:$0xff]  ;;  %v149_v29 = vld [vmem:[%s4795_s1 + $0x3c0] sm:$0xff]  ;;  %v2604_v32 = vpack.c.bf16 %v100_v23, %v99_v22 }
  0x22   :  { %2591 = vmatprep.subr.bf16.mxu0 %v2590_v48  ;;  %v150_v30 = vld [vmem:[%s4795_s1 + $0x3c8] sm:$0xff]  ;;  %v2636_v35 = vpack.c.bf16 %v132_v26, %v131_v24  ;;  %v101_v37 = vld [vmem:[%s4795_s1 + $0x240] sm:$0xff]  ;;  %v119_v42 = vld [vmem:[%s4795_s1 + $0x2d0] sm:$0xff] }
  0x23   :  { %2589 = vmatpush3.bf16.msra.mxu1 %v2588_v47  ;;  %v22_v31 = vld [vmem:[%s4794_s0 + $0x8] sm:$0xff]  ;;  %v133_v39 = vld [vmem:[%s4795_s1 + $0x340] sm:$0xff]  ;;  %v2638_v40 = vpack.c.bf16 %v150_v30, %v149_v29  ;;  %v120_v43 = vld [vmem:[%s4795_s1 + $0x2d8] sm:$0xff] }
  0x24   :  { %2623 = vmatprep.subr.bf16.mxu1 %v2622_v52  ;;  %789 = vmatmul.mubr.f32.vlgmr.msra.gmra.mrb[0].mxu0 %v563_v27  ;;  %v117_v27 = vld [vmem:[%s4795_s1 + $0x2c0] sm:$0xff]  ;;  %v573_v34 = vcombine.high %v22_v31, %v22_v31  ;;  %v102_v38 = vld [vmem:[%s4795_s1 + $0x248] sm:$0xff]  ;;  %v151_v46 = vld [vmem:[%s4795_s1 + $0x3d0] sm:$0xff]  ;;  %v2610_v51 = vpack.c.bf16 %v120_v43, %v119_v42 }
  0x25   :  { %2593 = vmatpush3.bf16.msra.mxu0 %v2592_v58  ;;  %v2606_v36 = vpack.c.bf16 %v118_v28, %v117_v27  ;;  %v134_v41 = vld [vmem:[%s4795_s1 + $0x348] sm:$0xff]  ;;  %v152_v47 = vld [vmem:[%s4795_s1 + $0x3d8] sm:$0xff]  ;;  %v2608_v48 = vpack.c.bf16 %v102_v38, %v101_v37  ;;  %v103_v52 = vld [vmem:[%s4795_s1 + $0x250] sm:$0xff] }
  0x26   :  { %859 = vmatmul.mubr.f32.vlgmr.msra.gmra.mrb[0].mxu1 %v570_v33  ;;  %2595 = vmatprep.subr.bf16.mxu0 %v2594_v60  ;;  %v3427_v33 = vrot.slane %v22_v31, %v3266_v13  ;;  %v3450_v45 = vrot.slane %v573_v34, %v3266_v13  ;;  %v2640_v50 = vpack.c.bf16 %v134_v41, %v133_v39  ;;  %v104_v53 = vld [vmem:[%s4795_s1 + $0x258] sm:$0xff]  ;;  %v135_v54 = vld [vmem:[%s4795_s1 + $0x350] sm:$0xff]  ;;  %v121_v57 = vld [vmem:[%s4795_s1 + $0x2e0] sm:$0xff] }
  0x27   :  { %2625 = vmatpush3.bf16.msra.mxu1 %v2624_v59  ;;  %v2642_v55 = vpack.c.bf16 %v152_v47, %v151_v46  ;;  %v136_v56 = vld [vmem:[%s4795_s1 + $0x358] sm:$0xff]  ;;  %v122_v58 = vld [vmem:[%s4795_s1 + $0x2e8] sm:$0xff]  ;;  %v153_v59 = vld [vmem:[%s4795_s1 + $0x3e0] sm:$0xff]  ;;  %v2612_v61 = vpack.c.bf16 %v104_v53, %v103_v52 }
  0x28   :  { %2627 = vmatprep.subr.bf16.mxu1 %v2626_v0  ;;  %v588_v44 = vcombine.high %v3427_v33, %v3427_v33  ;;  %v589_v49 = vcombine.high %v3450_v45, %v3450_v45  ;;  %v154_v60 = vld [vmem:[%s4795_s1 + $0x3e8] sm:$0xff]  ;;  %v2644_v62 = vpack.c.bf16 %v136_v56, %v135_v54  ;;  %v2614_v63 = vpack.c.bf16 %v122_v58, %v121_v57  ;;  %v105_v0 = vld [vmem:[%s4795_s1 + $0x260] sm:$0xff]  ;;  %v123_v5 = vld [vmem:[%s4795_s1 + $0x2f0] sm:$0xff] }
  0x29   :  { %2597 = vmatpush3.bf16.msra.mxu0 %v2596_v6  ;;  %v106_v1 = vld [vmem:[%s4795_s1 + $0x268] sm:$0xff]  ;;  %v137_v2 = vld [vmem:[%s4795_s1 + $0x360] sm:$0xff]  ;;  %v2646_v3 = vpack.c.bf16 %v154_v60, %v153_v59  ;;  %v124_v6 = vld [vmem:[%s4795_s1 + $0x2f8] sm:$0xff] }
  0x2a   :  { %2599 = vmatprep.subr.bf16.mxu0 %v2598_v8  ;;  %928 = vmatprep.mubr.f32.mxu0 %v588_v44  ;;  %v138_v4 = vld [vmem:[%s4795_s1 + $0x368] sm:$0xff]  ;;  %v156_v8 = vld [vmem:[%s4795_s1 + $0x3f8] sm:$0xff]  ;;  %v2616_v9 = vpack.c.bf16 %v106_v1, %v105_v0  ;;  %v2618_v11 = vpack.c.bf16 %v124_v6, %v123_v5  ;;  %v139_v15 = vld [vmem:[%s4795_s1 + $0x370] sm:$0xff] }
  0x2b   :  { %2629 = vmatpush3.bf16.msra.mxu1 %v2628_v7  ;;  %998 = vmatprep.mubr.f32.mxu1 %v589_v49  ;;  %v155_v7 = vld [vmem:[%s4795_s1 + $0x3f0] sm:$0xff]  ;;  %v2648_v10 = vpack.c.bf16 %v138_v4, %v137_v2  ;;  %v108_v14 = vld [vmem:[%s4795_s1 + $0x278] sm:$0xff]  ;;  %v173_v18 = vld [vmem:[%s4795_s1 + $0x480] sm:$0xff] }
  0x2c   :  { %2631 = vmatprep.subr.bf16.mxu1 %v2630_v12  ;;  %v107_v12 = vld [vmem:[%s4795_s1 + $0x270] sm:$0xff]  ;;  %v2650_v16 = vpack.c.bf16 %v156_v8, %v155_v7  ;;  %v140_v17 = vld [vmem:[%s4795_s1 + $0x378] sm:$0xff]  ;;  %v157_v23 = vld [vmem:[%s4795_s1 + $0x400] sm:$0xff] }
  0x2d   :  { %2601 = vmatpush3.bf16.msra.mxu0 %v2600_v19  ;;  %v174_v19 = vld [vmem:[%s4795_s1 + $0x488] sm:$0xff]  ;;  %v2620_v22 = vpack.c.bf16 %v108_v14, %v107_v12  ;;  %v2652_v24 = vpack.c.bf16 %v140_v17, %v139_v15  ;;  %v189_v27 = vld [vmem:[%s4795_s1 + $0x500] sm:$0xff]  ;;  %v175_v30 = vld [vmem:[%s4795_s1 + $0x490] sm:$0xff] }
  0x2e   :  { %2603 = vmatprep.subr.bf16.mxu0 %v2602_v21  ;;  %v206_v21 = vld [vmem:[%s4795_s1 + $0x588] sm:$0xff]  ;;  %v176_v31 = vld [vmem:[%s4795_s1 + $0x498] sm:$0xff]  ;;  %v23_v37 = vld [vmem:[%s4794_s0 + $0x10] sm:$0xff] }
  0x2f   :  { %2633 = vmatpush3.bf16.msra.mxu1 %v2632_v20  ;;  %v205_v20 = vld [vmem:[%s4795_s1 + $0x580] sm:$0xff]  ;;  %v158_v26 = vld [vmem:[%s4795_s1 + $0x408] sm:$0xff]  ;;  %v208_v34 = vld [vmem:[%s4795_s1 + $0x598] sm:$0xff]  ;;  %v2658_v38 = vpack.c.bf16 %v176_v31, %v175_v30  ;;  %v3569_v42 = vrot.slane %v23_v37, %v3266_v13  ;;  %v590_v43 = vcombine.high %v23_v37, %v23_v37 }
  0x30   :  { %2635 = vmatprep.subr.bf16.mxu1 %v2634_v25  ;;  %v2654_v25 = vpack.c.bf16 %v174_v19, %v173_v18  ;;  %v190_v28 = vld [vmem:[%s4795_s1 + $0x508] sm:$0xff]  ;;  %v2686_v29 = vpack.c.bf16 %v206_v21, %v205_v20  ;;  %v159_v39 = vld [vmem:[%s4795_s1 + $0x410] sm:$0xff]  ;;  %v192_v46 = vld [vmem:[%s4795_s1 + $0x518] sm:$0xff] }
  0x31   :  { %2605 = vmatpush3.bf16.msra.mxu0 %v2604_v32  ;;  %v207_v32 = vld [vmem:[%s4795_s1 + $0x590] sm:$0xff]  ;;  %v177_v47 = vld [vmem:[%s4795_s1 + $0x4a0] sm:$0xff]  ;;  %v3590_v52 = vrot.slane %v590_v43, %v3266_v13  ;;  %v162_v56 = vld [vmem:[%s4795_s1 + $0x428] sm:$0xff] }
  0x32   :  { %2607 = vmatprep.subr.bf16.mxu0 %v2606_v36  ;;  %v2688_v36 = vpack.c.bf16 %v190_v28, %v189_v27  ;;  %v191_v41 = vld [vmem:[%s4795_s1 + $0x510] sm:$0xff]  ;;  %v2690_v44 = vpack.c.bf16 %v208_v34, %v207_v32  ;;  %v209_v49 = vld [vmem:[%s4795_s1 + $0x5a0] sm:$0xff]  ;;  %v194_v59 = vld [vmem:[%s4795_s1 + $0x528] sm:$0xff] }
  0x33   :  { %2637 = vmatpush3.bf16.msra.mxu1 %v2636_v35  ;;  %v2656_v35 = vpack.c.bf16 %v158_v26, %v157_v23  ;;  %v193_v57 = vld [vmem:[%s4795_s1 + $0x520] sm:$0xff]  ;;  %v179_v60 = vld [vmem:[%s4795_s1 + $0x4b0] sm:$0xff]  ;;  %v164_v4 = vld [vmem:[%s4795_s1 + $0x438] sm:$0xff] }
  0x34   :  { %2639 = vmatprep.subr.bf16.mxu1 %v2638_v40  ;;  %v160_v40 = vld [vmem:[%s4795_s1 + $0x418] sm:$0xff]  ;;  %v2696_v1 = vpack.c.bf16 %v194_v59, %v193_v57  ;;  %v195_v5 = vld [vmem:[%s4795_s1 + $0x530] sm:$0xff]  ;;  %v181_v8 = vld [vmem:[%s4795_s1 + $0x4c0] sm:$0xff] }
  0x35   :  { %2609 = vmatpush3.bf16.msra.mxu0 %v2608_v48  ;;  %v178_v48 = vld [vmem:[%s4795_s1 + $0x4a8] sm:$0xff]  ;;  %v2660_v53 = vpack.c.bf16 %v160_v40, %v159_v39  ;;  %v196_v7 = vld [vmem:[%s4795_s1 + $0x538] sm:$0xff]  ;;  %v197_v18 = vld [vmem:[%s4795_s1 + $0x540] sm:$0xff] }
  0x36   :  { %2611 = vmatprep.subr.bf16.mxu0 %v2610_v51  ;;  %v605_v51 = vcombine.high %v3569_v42, %v3569_v42  ;;  %v2662_v54 = vpack.c.bf16 %v178_v48, %v177_v47  ;;  %v2700_v14 = vpack.c.bf16 %v196_v7, %v195_v5  ;;  %v166_v17 = vld [vmem:[%s4795_s1 + $0x448] sm:$0xff]  ;;  %v183_v21 = vld [vmem:[%s4795_s1 + $0x4d0] sm:$0xff]  ;;  %v200_v32 = vld [vmem:[%s4795_s1 + $0x558] sm:$0xff] }
  0x37   :  { %2641 = vmatpush3.bf16.msra.mxu1 %v2640_v50  ;;  %v210_v50 = vld [vmem:[%s4795_s1 + $0x5a8] sm:$0xff]  ;;  %v215_v23 = vld [vmem:[%s4795_s1 + $0x5d0] sm:$0xff]  ;;  %v185_v34 = vld [vmem:[%s4795_s1 + $0x4e0] sm:$0xff] }
  0x38   :  { %2643 = vmatprep.subr.bf16.mxu1 %v2642_v55  ;;  %v161_v55 = vld [vmem:[%s4795_s1 + $0x420] sm:$0xff]  ;;  %v2694_v58 = vpack.c.bf16 %v210_v50, %v209_v49  ;;  %v198_v20 = vld [vmem:[%s4795_s1 + $0x548] sm:$0xff]  ;;  %v167_v28 = vld [vmem:[%s4795_s1 + $0x450] sm:$0xff] }
  0x39   :  { %2613 = vmatpush3.bf16.msra.mxu0 %v2612_v61  ;;  %v180_v61 = vld [vmem:[%s4795_s1 + $0x4b8] sm:$0xff]  ;;  %v2664_v0 = vpack.c.bf16 %v162_v56, %v161_v55  ;;  %v2704_v26 = vpack.c.bf16 %v198_v20, %v197_v18  ;;  %v199_v30 = vld [vmem:[%s4795_s1 + $0x550] sm:$0xff]  ;;  %v218_v37 = vld [vmem:[%s4795_s1 + $0x5e8] sm:$0xff] }
  0x3a   :  { %2615 = vmatprep.subr.bf16.mxu0 %v2614_v63  ;;  %v212_v63 = vld [vmem:[%s4795_s1 + $0x5b8] sm:$0xff]  ;;  %v2666_v2 = vpack.c.bf16 %v180_v61, %v179_v60  ;;  %v2708_v39 = vpack.c.bf16 %v200_v32, %v199_v30  ;;  %v170_v43 = vld [vmem:[%s4795_s1 + $0x468] sm:$0xff]  ;;  %v187_v48 = vld [vmem:[%s4795_s1 + $0x4f0] sm:$0xff] }
  0x3b   :  { %2645 = vmatpush3.bf16.msra.mxu1 %v2644_v62  ;;  %v211_v62 = vld [vmem:[%s4795_s1 + $0x5b0] sm:$0xff]  ;;  %v202_v47 = vld [vmem:[%s4795_s1 + $0x568] sm:$0xff]  ;;  %v188_v49 = vld [vmem:[%s4795_s1 + $0x4f8] sm:$0xff] }
  0x3c   :  { %2647 = vmatprep.subr.bf16.mxu1 %v2646_v3  ;;  %v163_v3 = vld [vmem:[%s4795_s1 + $0x430] sm:$0xff]  ;;  %v2698_v6 = vpack.c.bf16 %v212_v63, %v211_v62  ;;  %v2682_v55 = vpack.c.bf16 %v188_v49, %v187_v48  ;;  %v172_v57 = vld [vmem:[%s4795_s1 + $0x478] sm:$0xff]  ;;  %v237_v60 = vld [vmem:[%s4795_s1 + $0x680] sm:$0xff] }
  0x3d   :  { %2617 = vmatpush3.bf16.msra.mxu0 %v2616_v9  ;;  %v182_v9 = vld [vmem:[%s4795_s1 + $0x4c8] sm:$0xff]  ;;  %v2668_v12 = vpack.c.bf16 %v164_v4, %v163_v3  ;;  %v219_v50 = vld [vmem:[%s4795_s1 + $0x5f0] sm:$0xff]  ;;  %v204_v59 = vld [vmem:[%s4795_s1 + $0x578] sm:$0xff] }
  0x3e   :  { %2619 = vmatprep.subr.bf16.mxu0 %v2618_v11  ;;  %v214_v11 = vld [vmem:[%s4795_s1 + $0x5c8] sm:$0xff]  ;;  %v2670_v15 = vpack.c.bf16 %v182_v9, %v181_v8  ;;  %v171_v56 = vld [vmem:[%s4795_s1 + $0x470] sm:$0xff]  ;;  %v269_v62 = vld [vmem:[%s4795_s1 + $0x780] sm:$0xff] }
  0x3f   :  { %2649 = vmatpush3.bf16.msra.mxu1 %v2648_v10  ;;  %v213_v10 = vld [vmem:[%s4795_s1 + $0x5c0] sm:$0xff]  ;;  %v238_v61 = vld [vmem:[%s4795_s1 + $0x688] sm:$0xff]  ;;  %v239_v9 = vld [vmem:[%s4795_s1 + $0x690] sm:$0xff] }
  0x40   :  { %2651 = vmatprep.subr.bf16.mxu1 %v2650_v16  ;;  %v165_v16 = vld [vmem:[%s4795_s1 + $0x440] sm:$0xff]  ;;  %v2702_v19 = vpack.c.bf16 %v214_v11, %v213_v10  ;;  %v270_v63 = vld [vmem:[%s4795_s1 + $0x788] sm:$0xff]  ;;  %v2718_v3 = vpack.c.bf16 %v238_v61, %v237_v60  ;;  %v240_v10 = vld [vmem:[%s4795_s1 + $0x698] sm:$0xff] }
  0x41   :  { %2621 = vmatpush3.bf16.msra.mxu0 %v2620_v22  ;;  %v184_v22 = vld [vmem:[%s4795_s1 + $0x4d8] sm:$0xff]  ;;  %v221_v4 = vld [vmem:[%s4795_s1 + $0x600] sm:$0xff]  ;;  %v222_v5 = vld [vmem:[%s4795_s1 + $0x608] sm:$0xff]  ;;  %v2750_v7 = vpack.c.bf16 %v270_v63, %v269_v62  ;;  %v2722_v18 = vpack.c.bf16 %v240_v10, %v239_v9 }
  0x42   :  { %2655 = vmatprep.subr.bf16.mxu0 %v2654_v25  ;;  %v2672_v25 = vpack.c.bf16 %v166_v17, %v165_v16  ;;  %v2674_v27 = vpack.c.bf16 %v184_v22, %v183_v21  ;;  %v254_v8 = vld [vmem:[%s4795_s1 + $0x708] sm:$0xff]  ;;  %v2720_v16 = vpack.c.bf16 %v222_v5, %v221_v4  ;;  %v224_v20 = vld [vmem:[%s4795_s1 + $0x618] sm:$0xff]  ;;  %v255_v21 = vld [vmem:[%s4795_s1 + $0x710] sm:$0xff] }
  0x43   :  { %2653 = vmatpush3.bf16.msra.mxu1 %v2652_v24  ;;  %v216_v24 = vld [vmem:[%s4795_s1 + $0x5d8] sm:$0xff]  ;;  %v259_v48 = vld [vmem:[%s4795_s1 + $0x730] sm:$0xff]  ;;  %v262_v61 = vld [vmem:[%s4795_s1 + $0x748] sm:$0xff] }
  0x44   :  { %2687 = vmatprep.subr.bf16.mxu1 %v2686_v29  ;;  %929 = vmatmul.mubr.f32.vlgmr.msra.gmra.mrb[2].mxu0 %v3427_v33  ;;  %v2692_v33 = vpack.c.bf16 %v192_v46, %v191_v41  ;;  %v168_v29 = vld [vmem:[%s4795_s1 + $0x458] sm:$0xff]  ;;  %v2706_v31 = vpack.c.bf16 %v216_v24, %v215_v23  ;;  %v169_v41 = vld [vmem:[%s4795_s1 + $0x460] sm:$0xff]  ;;  %v247_v62 = vld [vmem:[%s4795_s1 + $0x6d0] sm:$0xff] }
  0x45   :  { %2657 = vmatpush3.bf16.msra.mxu0 %v2656_v35  ;;  %1068 = vmatprep.mubr.f32.mxu0 %v605_v51  ;;  %v186_v35 = vld [vmem:[%s4795_s1 + $0x4e8] sm:$0xff]  ;;  %v220_v51 = vld [vmem:[%s4795_s1 + $0x5f8] sm:$0xff]  ;;  %v241_v24 = vld [vmem:[%s4795_s1 + $0x6a0] sm:$0xff] }
  0x46   :  { %999 = vmatmul.mubr.f32.vlgmr.msra.gmra.mrb[2].mxu1 %v3450_v45  ;;  %2659 = vmatprep.subr.bf16.mxu0 %v2658_v38  ;;  %v606_v45 = vcombine.high %v3590_v52, %v3590_v52  ;;  %v2676_v38 = vpack.c.bf16 %v168_v29, %v167_v28  ;;  %v2678_v40 = vpack.c.bf16 %v186_v35, %v185_v34  ;;  %v256_v23 = vld [vmem:[%s4795_s1 + $0x718] sm:$0xff]  ;;  %v274_v28 = vld [vmem:[%s4795_s1 + $0x7a8] sm:$0xff]  ;;  %v257_v35 = vld [vmem:[%s4795_s1 + $0x720] sm:$0xff] }
  0x47   :  { %2689 = vmatpush3.bf16.msra.mxu1 %v2688_v36  ;;  %v217_v36 = vld [vmem:[%s4795_s1 + $0x5e0] sm:$0xff]  ;;  %v226_v34 = vld [vmem:[%s4795_s1 + $0x628] sm:$0xff]  ;;  %v248_v63 = vld [vmem:[%s4795_s1 + $0x6d8] sm:$0xff] }
  0x48   :  { %2691 = vmatprep.subr.bf16.mxu1 %v2690_v44  ;;  %1138 = vmatprep.mubr.f32.mxu1 %v606_v45  ;;  %v201_v44 = vld [vmem:[%s4795_s1 + $0x560] sm:$0xff]  ;;  %v2710_v46 = vpack.c.bf16 %v218_v37, %v217_v36  ;;  %v203_v45 = vld [vmem:[%s4795_s1 + $0x570] sm:$0xff]  ;;  %v2738_v4 = vpack.c.bf16 %v248_v63, %v247_v62  ;;  %v264_v9 = vld [vmem:[%s4795_s1 + $0x758] sm:$0xff] }
  0x49   :  { %2661 = vmatpush3.bf16.msra.mxu0 %v2660_v53  ;;  %v2680_v53 = vpack.c.bf16 %v170_v43, %v169_v41  ;;  %v243_v37 = vld [vmem:[%s4795_s1 + $0x6b0] sm:$0xff]  ;;  %v249_v10 = vld [vmem:[%s4795_s1 + $0x6e0] sm:$0xff] }
  0x4a   :  { %2663 = vmatprep.subr.bf16.mxu0 %v2662_v54  ;;  %v2712_v54 = vpack.c.bf16 %v202_v47, %v201_v44  ;;  %v228_v47 = vld [vmem:[%s4795_s1 + $0x638] sm:$0xff]  ;;  %v231_v5 = vld [vmem:[%s4795_s1 + $0x650] sm:$0xff] }
  0x4b   :  { %2693 = vmatpush3.bf16.msra.mxu1 %v2692_v33  ;;  %v24_v33 = vld [vmem:[%s4794_s0 + $0x18] sm:$0xff]  ;;  %v319_v62 = vld [vmem:[%s4795_s1 + $0x910] sm:$0xff] }
  0x4c   :  { %2695 = vmatprep.subr.bf16.mxu1 %v2694_v58  ;;  %v2714_v58 = vpack.c.bf16 %v220_v51, %v219_v50  ;;  %v3761_v11 = vrot.slane %v24_v33, %v3266_v13  ;;  %v260_v50 = vld [vmem:[%s4795_s1 + $0x738] sm:$0xff]  ;;  %v245_v51 = vld [vmem:[%s4795_s1 + $0x6c0] sm:$0xff] }
  0x4d   :  { %2665 = vmatpush3.bf16.msra.mxu0 %v2664_v0  ;;  %v607_v0 = vcombine.high %v24_v33, %v24_v33  ;;  %v277_v33 = vld [vmem:[%s4795_s1 + $0x7c0] sm:$0xff] }
  0x4e   :  { %2667 = vmatprep.subr.bf16.mxu0 %v2666_v2  ;;  %v2716_v2 = vpack.c.bf16 %v204_v59, %v203_v45  ;;  %v229_v45 = vld [vmem:[%s4795_s1 + $0x640] sm:$0xff] }
  0x4f   :  { %2697 = vmatpush3.bf16.msra.mxu1 %v2696_v1  ;;  %v2684_v1 = vpack.c.bf16 %v172_v57, %v171_v56  ;;  %v2764_v56 = vpack.c.bf16 %v260_v50, %v259_v48  ;;  %v261_v59 = vld [vmem:[%s4795_s1 + $0x740] sm:$0xff]  ;;  %v286_v48 = vld [vmem:[%s4795_s1 + $0x808] sm:$0xff] }
  0x50   :  { %2699 = vmatprep.subr.bf16.mxu1 %v2698_v6  ;;  %v253_v6 = vld [vmem:[%s4795_s1 + $0x700] sm:$0xff] }
  0x51   :  { %2669 = vmatpush3.bf16.msra.mxu0 %v2668_v12  ;;  %v271_v12 = vld [vmem:[%s4795_s1 + $0x790] sm:$0xff]  ;;  %v2752_v17 = vpack.c.bf16 %v254_v8, %v253_v6  ;;  %v232_v6 = vld [vmem:[%s4795_s1 + $0x658] sm:$0xff] }
  0x52   :  { %2671 = vmatprep.subr.bf16.mxu0 %v2670_v15  ;;  %v3770_v15 = vrot.slane %v607_v0, %v3266_v13  ;;  %v279_v0 = vld [vmem:[%s4795_s1 + $0x7d0] sm:$0xff] }
  0x53   :  { %2701 = vmatpush3.bf16.msra.mxu1 %v2700_v14  ;;  %v272_v14 = vld [vmem:[%s4795_s1 + $0x798] sm:$0xff] }
  0x54   :  { %2703 = vmatprep.subr.bf16.mxu1 %v2702_v19  ;;  %v223_v19 = vld [vmem:[%s4795_s1 + $0x610] sm:$0xff]  ;;  %v2754_v22 = vpack.c.bf16 %v272_v14, %v271_v12  ;;  %v623_v29 = vcombine.high %v3770_v15, %v3770_v15  ;;  %v250_v12 = vld [vmem:[%s4795_s1 + $0x6e8] sm:$0xff]  ;;  %v281_v14 = vld [vmem:[%s4795_s1 + $0x7e0] sm:$0xff] }
  0x55   :  { %2673 = vmatpush3.bf16.msra.mxu0 %v2672_v25  ;;  %v242_v25 = vld [vmem:[%s4795_s1 + $0x6a8] sm:$0xff]  ;;  %v2724_v30 = vpack.c.bf16 %v224_v20, %v223_v19  ;;  %v2742_v19 = vpack.c.bf16 %v250_v12, %v249_v10  ;;  %v233_v20 = vld [vmem:[%s4795_s1 + $0x660] sm:$0xff] }
  0x56   :  { %2675 = vmatprep.subr.bf16.mxu0 %v2674_v27  ;;  %v273_v27 = vld [vmem:[%s4795_s1 + $0x7a0] sm:$0xff]  ;;  %v2726_v32 = vpack.c.bf16 %v242_v25, %v241_v24  ;;  %v266_v24 = vld [vmem:[%s4795_s1 + $0x768] sm:$0xff]  ;;  %v251_v25 = vld [vmem:[%s4795_s1 + $0x6f0] sm:$0xff] }
  0x57   :  { %2705 = vmatpush3.bf16.msra.mxu1 %v2704_v26  ;;  %v622_v26 = vcombine.high %v3761_v11, %v3761_v11  ;;  %v2758_v36 = vpack.c.bf16 %v274_v28, %v273_v27  ;;  %v283_v27 = vld [vmem:[%s4795_s1 + $0x7f0] sm:$0xff]  ;;  %v284_v28 = vld [vmem:[%s4795_s1 + $0x7f8] sm:$0xff]  ;;  %v290_v10 = vld [vmem:[%s4795_s1 + $0x828] sm:$0xff] }
  0x58   :  { %2707 = vmatprep.subr.bf16.mxu1 %v2706_v31  ;;  %v2756_v31 = vpack.c.bf16 %v256_v23, %v255_v21  ;;  %v234_v21 = vld [vmem:[%s4795_s1 + $0x668] sm:$0xff]  ;;  %v321_v12 = vld [vmem:[%s4795_s1 + $0x920] sm:$0xff] }
  0x59   :  { %2677 = vmatpush3.bf16.msra.mxu0 %v2676_v38  ;;  %v244_v38 = vld [vmem:[%s4795_s1 + $0x6b8] sm:$0xff] }
  0x5a   :  { %2679 = vmatprep.subr.bf16.mxu0 %v2678_v40  ;;  %v276_v40 = vld [vmem:[%s4795_s1 + $0x7b8] sm:$0xff]  ;;  %v2730_v44 = vpack.c.bf16 %v244_v38, %v243_v37  ;;  %v301_v37 = vld [vmem:[%s4795_s1 + $0x880] sm:$0xff]  ;;  %v302_v38 = vld [vmem:[%s4795_s1 + $0x888] sm:$0xff] }
  0x5b   :  { %2709 = vmatpush3.bf16.msra.mxu1 %v2708_v39  ;;  %v275_v39 = vld [vmem:[%s4795_s1 + $0x7b0] sm:$0xff] }
  0x5c   :  { %2711 = vmatprep.subr.bf16.mxu1 %v2710_v46  ;;  %v227_v46 = vld [vmem:[%s4795_s1 + $0x630] sm:$0xff]  ;;  %v2762_v49 = vpack.c.bf16 %v276_v40, %v275_v39  ;;  %v333_v39 = vld [vmem:[%s4795_s1 + $0x980] sm:$0xff]  ;;  %v334_v40 = vld [vmem:[%s4795_s1 + $0x988] sm:$0xff] }
  0x5d   :  { %2681 = vmatpush3.bf16.msra.mxu0 %v2680_v53  ;;  %v246_v53 = vld [vmem:[%s4795_s1 + $0x6c8] sm:$0xff]  ;;  %v2814_v50 = vpack.c.bf16 %v334_v40, %v333_v39  ;;  %v311_v39 = vld [vmem:[%s4795_s1 + $0x8d0] sm:$0xff]  ;;  %v312_v40 = vld [vmem:[%s4795_s1 + $0x8d8] sm:$0xff] }
  0x5e   :  { %2683 = vmatprep.subr.bf16.mxu0 %v2682_v55  ;;  %v2732_v55 = vpack.c.bf16 %v228_v47, %v227_v46  ;;  %v2734_v57 = vpack.c.bf16 %v246_v53, %v245_v51  ;;  %v2782_v46 = vpack.c.bf16 %v302_v38, %v301_v37  ;;  %v285_v47 = vld [vmem:[%s4795_s1 + $0x800] sm:$0xff]  ;;  %v318_v51 = vld [vmem:[%s4795_s1 + $0x908] sm:$0xff]  ;;  %v303_v53 = vld [vmem:[%s4795_s1 + $0x890] sm:$0xff] }
  0x5f   :  { %2713 = vmatpush3.bf16.msra.mxu1 %v2712_v54  ;;  %v278_v54 = vld [vmem:[%s4795_s1 + $0x7c8] sm:$0xff] }
  0x60   :  { %2715 = vmatprep.subr.bf16.mxu1 %v2714_v58  ;;  %v230_v58 = vld [vmem:[%s4795_s1 + $0x648] sm:$0xff]  ;;  %v2766_v60 = vpack.c.bf16 %v278_v54, %v277_v33  ;;  %v304_v33 = vld [vmem:[%s4795_s1 + $0x898] sm:$0xff] }
  0x61   :  { %2685 = vmatpush3.bf16.msra.mxu0 %v2684_v1  ;;  %v280_v1 = vld [vmem:[%s4795_s1 + $0x7d8] sm:$0xff]  ;;  %v326_v38 = vld [vmem:[%s4795_s1 + $0x948] sm:$0xff] }
  0x62   :  { %2719 = vmatprep.subr.bf16.mxu0 %v2718_v3  ;;  %v2768_v3 = vpack.c.bf16 %v262_v61, %v261_v59  ;;  %v2770_v8 = vpack.c.bf16 %v280_v1, %v279_v0  ;;  %v2786_v59 = vpack.c.bf16 %v304_v33, %v303_v53  ;;  %v288_v61 = vld [vmem:[%s4795_s1 + $0x818] sm:$0xff]  ;;  %v305_v1 = vld [vmem:[%s4795_s1 + $0x8a0] sm:$0xff] }
  0x63   :  { %2717 = vmatpush3.bf16.msra.mxu1 %v2716_v2  ;;  %v2736_v2 = vpack.c.bf16 %v230_v58, %v229_v45  ;;  %v2784_v45 = vpack.c.bf16 %v286_v48, %v285_v47  ;;  %v320_v0 = vld [vmem:[%s4795_s1 + $0x918] sm:$0xff]  ;;  %v2802_v47 = vpack.c.bf16 %v312_v40, %v311_v39  ;;  %v295_v48 = vld [vmem:[%s4795_s1 + $0x850] sm:$0xff]  ;;  %v313_v33 = vld [vmem:[%s4795_s1 + $0x8e0] sm:$0xff] }
  0x64   :  { %2751 = vmatprep.subr.bf16.mxu1 %v2750_v7  ;;  %1069 = vmatmul.mubr.f32.vlgmr.msra.gmra.mrb[4].mxu0 %v3569_v42  ;;  %v225_v42 = vld [vmem:[%s4795_s1 + $0x620] sm:$0xff]  ;;  %v263_v7 = vld [vmem:[%s4795_s1 + $0x750] sm:$0xff]  ;;  %v328_v53 = vld [vmem:[%s4795_s1 + $0x958] sm:$0xff] }
  0x65   :  { %2721 = vmatpush3.bf16.msra.mxu0 %v2720_v16  ;;  %1208 = vmatprep.mubr.f32.mxu0 %v622_v26  ;;  %v2728_v41 = vpack.c.bf16 %v226_v34, %v225_v42  ;;  %v282_v16 = vld [vmem:[%s4795_s1 + $0x7e8] sm:$0xff]  ;;  %v252_v26 = vld [vmem:[%s4795_s1 + $0x6f8] sm:$0xff]  ;;  %v235_v42 = vld [vmem:[%s4795_s1 + $0x670] sm:$0xff] }
  0x66   :  { %1139 = vmatmul.mubr.f32.vlgmr.msra.gmra.mrb[4].mxu1 %v3590_v52  ;;  %2723 = vmatprep.subr.bf16.mxu0 %v2722_v18  ;;  %v258_v52 = vld [vmem:[%s4795_s1 + $0x728] sm:$0xff]  ;;  %v2772_v18 = vpack.c.bf16 %v264_v9, %v263_v7  ;;  %v2774_v23 = vpack.c.bf16 %v282_v16, %v281_v14  ;;  %v236_v34 = vld [vmem:[%s4795_s1 + $0x678] sm:$0xff]  ;;  %v307_v16 = vld [vmem:[%s4795_s1 + $0x8b0] sm:$0xff] }
  0x67   :  { %2753 = vmatpush3.bf16.msra.mxu1 %v2752_v17  ;;  %1278 = vmatprep.mubr.f32.mxu1 %v623_v29  ;;  %v2760_v43 = vpack.c.bf16 %v258_v52, %v257_v35  ;;  %v2740_v17 = vpack.c.bf16 %v232_v6, %v231_v5  ;;  %v2744_v29 = vpack.c.bf16 %v234_v21, %v233_v20  ;;  %v267_v35 = vld [vmem:[%s4795_s1 + $0x770] sm:$0xff]  ;;  %v268_v52 = vld [vmem:[%s4795_s1 + $0x778] sm:$0xff]  ;;  %v338_v5 = vld [vmem:[%s4795_s1 + $0x9a8] sm:$0xff] }
  0x68   :  { %2755 = vmatprep.subr.bf16.mxu1 %v2754_v22  ;;  %v265_v22 = vld [vmem:[%s4795_s1 + $0x760] sm:$0xff]  ;;  %v383_v39 = vld [vmem:[%s4795_s1 + $0xb10] sm:$0xff] }
  0x69   :  { %2725 = vmatpush3.bf16.msra.mxu0 %v2724_v30  ;;  %v25_v30 = vld [vmem:[%s4794_s0 + $0x20] sm:$0xff] }
  0x6a   :  { %2727 = vmatprep.subr.bf16.mxu0 %v2726_v32  ;;  %v2746_v32 = vpack.c.bf16 %v252_v26, %v251_v25  ;;  %v3968_v54 = vrot.slane %v25_v30, %v3266_v13  ;;  %v323_v25 = vld [vmem:[%s4795_s1 + $0x930] sm:$0xff] }
  0x6b   :  { %2757 = vmatpush3.bf16.msra.mxu1 %v2756_v31  ;;  %v2776_v31 = vpack.c.bf16 %v266_v24, %v265_v22  ;;  %v292_v24 = vld [vmem:[%s4795_s1 + $0x838] sm:$0xff] }
  0x6c   :  { %2759 = vmatprep.subr.bf16.mxu1 %v2758_v36  ;;  %v2778_v36 = vpack.c.bf16 %v284_v28, %v283_v27  ;;  %v324_v27 = vld [vmem:[%s4795_s1 + $0x938] sm:$0xff]  ;;  %v309_v28 = vld [vmem:[%s4795_s1 + $0x8c0] sm:$0xff] }
  0x6d   :  { %2729 = vmatpush3.bf16.msra.mxu0 %v2728_v41  ;;  %v624_v41 = vcombine.high %v25_v30, %v25_v30  ;;  %v341_v30 = vld [vmem:[%s4795_s1 + $0x9c0] sm:$0xff] }
  0x6e   :  { %2731 = vmatprep.subr.bf16.mxu0 %v2730_v44  ;;  %v2780_v44 = vpack.c.bf16 %v268_v52, %v267_v35  ;;  %v293_v35 = vld [vmem:[%s4795_s1 + $0x840] sm:$0xff] }
  0x6f   :  { %2761 = vmatpush3.bf16.msra.mxu1 %v2760_v43  ;;  %v2748_v43 = vpack.c.bf16 %v236_v34, %v235_v42  ;;  %v2828_v42 = vpack.c.bf16 %v324_v27, %v323_v25  ;;  %v325_v52 = vld [vmem:[%s4795_s1 + $0x940] sm:$0xff]  ;;  %v350_v25 = vld [vmem:[%s4795_s1 + $0xa08] sm:$0xff] }
  0x70   :  { %2763 = vmatprep.subr.bf16.mxu1 %v2762_v49  ;;  %v317_v49 = vld [vmem:[%s4795_s1 + $0x900] sm:$0xff] }
  0x71   :  { %2733 = vmatpush3.bf16.msra.mxu0 %v2732_v55  ;;  %v335_v55 = vld [vmem:[%s4795_s1 + $0x990] sm:$0xff]  ;;  %v2816_v58 = vpack.c.bf16 %v318_v51, %v317_v49  ;;  %v296_v49 = vld [vmem:[%s4795_s1 + $0x858] sm:$0xff] }
  0x72   :  { %2735 = vmatprep.subr.bf16.mxu0 %v2734_v57  ;;  %v3977_v57 = vrot.slane %v624_v41, %v3266_v13  ;;  %v343_v41 = vld [vmem:[%s4795_s1 + $0x9d0] sm:$0xff] }
  0x73   :  { %2765 = vmatpush3.bf16.msra.mxu1 %v2764_v56  ;;  %v336_v56 = vld [vmem:[%s4795_s1 + $0x998] sm:$0xff] }
  0x74   :  { %2767 = vmatprep.subr.bf16.mxu1 %v2766_v60  ;;  %v287_v60 = vld [vmem:[%s4795_s1 + $0x810] sm:$0xff]  ;;  %v2818_v63 = vpack.c.bf16 %v336_v56, %v335_v55  ;;  %v640_v6 = vcombine.high %v3977_v57, %v3977_v57  ;;  %v314_v55 = vld [vmem:[%s4795_s1 + $0x8e8] sm:$0xff]  ;;  %v345_v56 = vld [vmem:[%s4795_s1 + $0x9e0] sm:$0xff] }
  0x75   :  { %2737 = vmatpush3.bf16.msra.mxu0 %v2736_v2  ;;  %v306_v2 = vld [vmem:[%s4795_s1 + $0x8a8] sm:$0xff]  ;;  %v2788_v7 = vpack.c.bf16 %v288_v61, %v287_v60  ;;  %v2806_v60 = vpack.c.bf16 %v314_v55, %v313_v33  ;;  %v297_v61 = vld [vmem:[%s4795_s1 + $0x860] sm:$0xff] }
  0x76   :  { %2739 = vmatprep.subr.bf16.mxu0 %v2738_v4  ;;  %v337_v4 = vld [vmem:[%s4795_s1 + $0x9a0] sm:$0xff]  ;;  %v2790_v9 = vpack.c.bf16 %v306_v2, %v305_v1  ;;  %v330_v1 = vld [vmem:[%s4795_s1 + $0x968] sm:$0xff]  ;;  %v315_v2 = vld [vmem:[%s4795_s1 + $0x8f0] sm:$0xff] }
  0x77   :  { %2769 = vmatpush3.bf16.msra.mxu1 %v2768_v3  ;;  %v639_v3 = vcombine.high %v3968_v54, %v3968_v54  ;;  %v2822_v14 = vpack.c.bf16 %v338_v5, %v337_v4  ;;  %v347_v4 = vld [vmem:[%s4795_s1 + $0x9f0] sm:$0xff]  ;;  %v348_v5 = vld [vmem:[%s4795_s1 + $0x9f8] sm:$0xff]  ;;  %v354_v33 = vld [vmem:[%s4795_s1 + $0xa28] sm:$0xff] }
  0x78   :  { %2771 = vmatprep.subr.bf16.mxu1 %v2770_v8  ;;  %v2820_v8 = vpack.c.bf16 %v320_v0, %v319_v62  ;;  %v298_v62 = vld [vmem:[%s4795_s1 + $0x868] sm:$0xff]  ;;  %v385_v55 = vld [vmem:[%s4795_s1 + $0xb20] sm:$0xff] }
  0x79   :  { %2741 = vmatpush3.bf16.msra.mxu0 %v2740_v17  ;;  %v308_v17 = vld [vmem:[%s4795_s1 + $0x8b8] sm:$0xff] }
  0x7a   :  { %2743 = vmatprep.subr.bf16.mxu0 %v2742_v19  ;;  %v340_v19 = vld [vmem:[%s4795_s1 + $0x9b8] sm:$0xff]  ;;  %v2794_v22 = vpack.c.bf16 %v308_v17, %v307_v16  ;;  %v365_v16 = vld [vmem:[%s4795_s1 + $0xa80] sm:$0xff]  ;;  %v366_v17 = vld [vmem:[%s4795_s1 + $0xa88] sm:$0xff] }
  0x7b   :  { %2773 = vmatpush3.bf16.msra.mxu1 %v2772_v18  ;;  %v339_v18 = vld [vmem:[%s4795_s1 + $0x9b0] sm:$0xff] }
  0x7c   :  { %2775 = vmatprep.subr.bf16.mxu1 %v2774_v23  ;;  %v291_v23 = vld [vmem:[%s4795_s1 + $0x830] sm:$0xff]  ;;  %v2826_v26 = vpack.c.bf16 %v340_v19, %v339_v18  ;;  %v397_v18 = vld [vmem:[%s4795_s1 + $0xb80] sm:$0xff]  ;;  %v398_v19 = vld [vmem:[%s4795_s1 + $0xb88] sm:$0xff] }
  0x7d   :  { %2745 = vmatpush3.bf16.msra.mxu0 %v2744_v29  ;;  %v310_v29 = vld [vmem:[%s4795_s1 + $0x8c8] sm:$0xff]  ;;  %v2878_v27 = vpack.c.bf16 %v398_v19, %v397_v18 }
  0x7e   :  { %2747 = vmatprep.subr.bf16.mxu0 %v2746_v32  ;;  %v2796_v32 = vpack.c.bf16 %v292_v24, %v291_v23  ;;  %v2798_v34 = vpack.c.bf16 %v310_v29, %v309_v28  ;;  %v2846_v23 = vpack.c.bf16 %v366_v17, %v365_v16  ;;  %v349_v24 = vld [vmem:[%s4795_s1 + $0xa00] sm:$0xff]  ;;  %v382_v28 = vld [vmem:[%s4795_s1 + $0xb08] sm:$0xff]  ;;  %v367_v29 = vld [vmem:[%s4795_s1 + $0xa90] sm:$0xff] }
  0x7f   :  { %2777 = vmatpush3.bf16.msra.mxu1 %v2776_v31  ;;  %v342_v31 = vld [vmem:[%s4795_s1 + $0x9c8] sm:$0xff] }
  0x80   :  { %2779 = vmatprep.subr.bf16.mxu1 %v2778_v36  ;;  %v294_v36 = vld [vmem:[%s4795_s1 + $0x848] sm:$0xff]  ;;  %v2830_v37 = vpack.c.bf16 %v342_v31, %v341_v30  ;;  %v368_v30 = vld [vmem:[%s4795_s1 + $0xa98] sm:$0xff] }
  0x81   :  { %2749 = vmatpush3.bf16.msra.mxu0 %v2748_v43  ;;  %v344_v43 = vld [vmem:[%s4795_s1 + $0x9d8] sm:$0xff] }
  0x82   :  { %2783 = vmatprep.subr.bf16.mxu0 %v2782_v46  ;;  %v2832_v46 = vpack.c.bf16 %v326_v38, %v325_v52  ;;  %v2834_v51 = vpack.c.bf16 %v344_v43, %v343_v41  ;;  %v2850_v52 = vpack.c.bf16 %v368_v30, %v367_v29  ;;  %v352_v38 = vld [vmem:[%s4795_s1 + $0xa18] sm:$0xff]  ;;  %v369_v43 = vld [vmem:[%s4795_s1 + $0xaa0] sm:$0xff] }
  0x83   :  { %2781 = vmatpush3.bf16.msra.mxu1 %v2780_v44  ;;  %v2800_v44 = vpack.c.bf16 %v294_v36, %v293_v35  ;;  %v2848_v35 = vpack.c.bf16 %v350_v25, %v349_v24  ;;  %v384_v41 = vld [vmem:[%s4795_s1 + $0xb18] sm:$0xff] }
  0x84   :  { %2815 = vmatprep.subr.bf16.mxu1 %v2814_v50  ;;  %1209 = vmatmul.mubr.f32.vlgmr.msra.gmra.mrb[6].mxu0 %v3761_v11  ;;  %v289_v11 = vld [vmem:[%s4795_s1 + $0x820] sm:$0xff]  ;;  %v327_v50 = vld [vmem:[%s4795_s1 + $0x950] sm:$0xff] }
  0x85   :  { %2785 = vmatpush3.bf16.msra.mxu0 %v2784_v45  ;;  %1348 = vmatprep.mubr.f32.mxu0 %v639_v3  ;;  %v2792_v20 = vpack.c.bf16 %v290_v10, %v289_v11  ;;  %v346_v45 = vld [vmem:[%s4795_s1 + $0x9e8] sm:$0xff]  ;;  %v316_v3 = vld [vmem:[%s4795_s1 + $0x8f8] sm:$0xff]  ;;  %v299_v11 = vld [vmem:[%s4795_s1 + $0x870] sm:$0xff] }
  0x86   :  { %1279 = vmatmul.mubr.f32.vlgmr.msra.gmra.mrb[6].mxu1 %v3770_v15  ;;  %2787 = vmatprep.subr.bf16.mxu0 %v2786_v59  ;;  %v322_v15 = vld [vmem:[%s4795_s1 + $0x928] sm:$0xff]  ;;  %v2836_v59 = vpack.c.bf16 %v328_v53, %v327_v50  ;;  %v2838_v0 = vpack.c.bf16 %v346_v45, %v345_v56  ;;  %v300_v10 = vld [vmem:[%s4795_s1 + $0x878] sm:$0xff]  ;;  %v371_v45 = vld [vmem:[%s4795_s1 + $0xab0] sm:$0xff] }
  0x87   :  { %2817 = vmatpush3.bf16.msra.mxu1 %v2816_v58  ;;  %1418 = vmatprep.mubr.f32.mxu1 %v640_v6  ;;  %v2824_v21 = vpack.c.bf16 %v322_v15, %v321_v12  ;;  %v2804_v58 = vpack.c.bf16 %v296_v49, %v295_v48  ;;  %v2808_v6 = vpack.c.bf16 %v298_v62, %v297_v61  ;;  %v331_v12 = vld [vmem:[%s4795_s1 + $0x970] sm:$0xff]  ;;  %v332_v15 = vld [vmem:[%s4795_s1 + $0x978] sm:$0xff]  ;;  %v402_v48 = vld [vmem:[%s4795_s1 + $0xba8] sm:$0xff] }
  0x88   :  { %2819 = vmatprep.subr.bf16.mxu1 %v2818_v63  ;;  %v329_v63 = vld [vmem:[%s4795_s1 + $0x960] sm:$0xff] }
  0x89   :  { %2789 = vmatpush3.bf16.msra.mxu0 %v2788_v7  ;;  %v26_v7 = vld [vmem:[%s4794_s0 + $0x28] sm:$0xff] }
  0x8a   :  { %2791 = vmatprep.subr.bf16.mxu0 %v2790_v9  ;;  %v2810_v9 = vpack.c.bf16 %v316_v3, %v315_v2  ;;  %v4175_v31 = vrot.slane %v26_v7, %v3266_v13  ;;  %v387_v2 = vld [vmem:[%s4795_s1 + $0xb30] sm:$0xff] }
  0x8b   :  { %2821 = vmatpush3.bf16.msra.mxu1 %v2820_v8  ;;  %v2840_v8 = vpack.c.bf16 %v330_v1, %v329_v63  ;;  %v356_v1 = vld [vmem:[%s4795_s1 + $0xa38] sm:$0xff] }
  0x8c   :  { %2823 = vmatprep.subr.bf16.mxu1 %v2822_v14  ;;  %v2842_v14 = vpack.c.bf16 %v348_v5, %v347_v4  ;;  %v388_v4 = vld [vmem:[%s4795_s1 + $0xb38] sm:$0xff]  ;;  %v373_v5 = vld [vmem:[%s4795_s1 + $0xac0] sm:$0xff] }
  0x8d   :  { %2793 = vmatpush3.bf16.msra.mxu0 %v2792_v20  ;;  %v641_v20 = vcombine.high %v26_v7, %v26_v7  ;;  %v405_v7 = vld [vmem:[%s4795_s1 + $0xbc0] sm:$0xff] }
  0x8e   :  { %2795 = vmatprep.subr.bf16.mxu0 %v2794_v22  ;;  %v2844_v22 = vpack.c.bf16 %v332_v15, %v331_v12  ;;  %v389_v15 = vld [vmem:[%s4795_s1 + $0xb40] sm:$0xff] }
  0x8f   :  { %2825 = vmatpush3.bf16.msra.mxu1 %v2824_v21  ;;  %v2812_v21 = vpack.c.bf16 %v300_v10, %v299_v11  ;;  %v357_v11 = vld [vmem:[%s4795_s1 + $0xa40] sm:$0xff]  ;;  %v2892_v10 = vpack.c.bf16 %v388_v4, %v387_v2 }
  0x90   :  { %2827 = vmatprep.subr.bf16.mxu1 %v2826_v26  ;;  %v381_v26 = vld [vmem:[%s4795_s1 + $0xb00] sm:$0xff] }
  0x91   :  { %2797 = vmatpush3.bf16.msra.mxu0 %v2796_v32  ;;  %v399_v32 = vld [vmem:[%s4795_s1 + $0xb90] sm:$0xff]  ;;  %v2880_v36 = vpack.c.bf16 %v382_v28, %v381_v26 }
  0x92   :  { %2799 = vmatprep.subr.bf16.mxu0 %v2798_v34  ;;  %v4184_v34 = vrot.slane %v641_v20, %v3266_v13 }
  0x93   :  { %2829 = vmatpush3.bf16.msra.mxu1 %v2828_v42  ;;  %v400_v42 = vld [vmem:[%s4795_s1 + $0xb98] sm:$0xff] }
  0x94   :  { %2831 = vmatprep.subr.bf16.mxu1 %v2830_v37  ;;  %v351_v37 = vld [vmem:[%s4795_s1 + $0xa10] sm:$0xff]  ;;  %v2882_v40 = vpack.c.bf16 %v400_v42, %v399_v32  ;;  %v657_v49 = vcombine.high %v4184_v34, %v4184_v34 }
  0x95   :  { %2801 = vmatpush3.bf16.msra.mxu0 %v2800_v44  ;;  %v370_v44 = vld [vmem:[%s4795_s1 + $0xaa8] sm:$0xff]  ;;  %v2852_v50 = vpack.c.bf16 %v352_v38, %v351_v37 }
  0x96   :  { %2803 = vmatprep.subr.bf16.mxu0 %v2802_v47  ;;  %v401_v47 = vld [vmem:[%s4795_s1 + $0xba0] sm:$0xff]  ;;  %v2854_v53 = vpack.c.bf16 %v370_v44, %v369_v43 }
  0x97   :  { %2833 = vmatpush3.bf16.msra.mxu1 %v2832_v46  ;;  %v656_v46 = vcombine.high %v4175_v31, %v4175_v31  ;;  %v2886_v56 = vpack.c.bf16 %v402_v48, %v401_v47 }
  0x98   :  { %2835 = vmatprep.subr.bf16.mxu1 %v2834_v51  ;;  %v2884_v51 = vpack.c.bf16 %v384_v41, %v383_v39 }
  0x99   :  { %2805 = vmatpush3.bf16.msra.mxu0 %v2804_v58  ;;  %v372_v58 = vld [vmem:[%s4795_s1 + $0xab8] sm:$0xff] }
  0x9a   :  { %2807 = vmatprep.subr.bf16.mxu0 %v2806_v60  ;;  %v404_v60 = vld [vmem:[%s4795_s1 + $0xbb8] sm:$0xff]  ;;  %v2858_v63 = vpack.c.bf16 %v372_v58, %v371_v45 }
  0x9b   :  { %2837 = vmatpush3.bf16.msra.mxu1 %v2836_v59  ;;  %v403_v59 = vld [vmem:[%s4795_s1 + $0xbb0] sm:$0xff] }
  0x9c   :  { %2839 = vmatprep.subr.bf16.mxu1 %v2838_v0  ;;  %v355_v0 = vld [vmem:[%s4795_s1 + $0xa30] sm:$0xff]  ;;  %v2890_v3 = vpack.c.bf16 %v404_v60, %v403_v59 }
  0x9d   :  { %2809 = vmatpush3.bf16.msra.mxu0 %v2808_v6  ;;  %v374_v6 = vld [vmem:[%s4795_s1 + $0xac8] sm:$0xff] }
  0x9e   :  { %2811 = vmatprep.subr.bf16.mxu0 %v2810_v9  ;;  %v2860_v9 = vpack.c.bf16 %v356_v1, %v355_v0  ;;  %v2862_v12 = vpack.c.bf16 %v374_v6, %v373_v5 }
  0x9f   :  { %2841 = vmatpush3.bf16.msra.mxu1 %v2840_v8  ;;  %v406_v8 = vld [vmem:[%s4795_s1 + $0xbc8] sm:$0xff] }
  0xa0   :  { %2843 = vmatprep.subr.bf16.mxu1 %v2842_v14  ;;  %v358_v14 = vld [vmem:[%s4795_s1 + $0xa48] sm:$0xff] }
  0xa1   :  { %2813 = vmatpush3.bf16.msra.mxu0 %v2812_v21 }
  0xa2   :  { %2847 = vmatprep.subr.bf16.mxu0 %v2846_v23 }
  0xa3   :  { %2845 = vmatpush3.bf16.msra.mxu1 %v2844_v22 }
  0xa4   :  { %2879 = vmatprep.subr.bf16.mxu1 %v2878_v27  ;;  %1349 = vmatmul.mubr.f32.vlgmr.msra.gmra.mrb[8].mxu0 %v3968_v54  ;;  %v353_v54 = vld [vmem:[%s4795_s1 + $0xa20] sm:$0xff] }
  0xa5   :  { %2849 = vmatpush3.bf16.msra.mxu0 %v2848_v35  ;;  %1488 = vmatprep.mubr.f32.mxu0 %v656_v46  ;;  %v2856_v61 = vpack.c.bf16 %v354_v33, %v353_v54 }
  0xa6   :  { %1419 = vmatmul.mubr.f32.vlgmr.msra.gmra.mrb[8].mxu1 %v3977_v57  ;;  %2851 = vmatprep.subr.bf16.mxu0 %v2850_v52  ;;  %v386_v57 = vld [vmem:[%s4795_s1 + $0xb28] sm:$0xff] }
  0xa7   :  { %2881 = vmatpush3.bf16.msra.mxu1 %v2880_v36  ;;  %1558 = vmatprep.mubr.f32.mxu1 %v657_v49  ;;  %v2888_v62 = vpack.c.bf16 %v386_v57, %v385_v55 }
  0xa8   :  { %2883 = vmatprep.subr.bf16.mxu1 %v2882_v40 }
  0xa9   :  { %2853 = vmatpush3.bf16.msra.mxu0 %v2852_v50 }
  0xaa   :  { %2855 = vmatprep.subr.bf16.mxu0 %v2854_v53 }
  0xab   :  { %2885 = vmatpush3.bf16.msra.mxu1 %v2884_v51 }
  0xac   :  { %2887 = vmatprep.subr.bf16.mxu1 %v2886_v56 }
  0xad   :  { %2857 = vmatpush3.bf16.msra.mxu0 %v2856_v61 }
  0xae   :  { %2859 = vmatprep.subr.bf16.mxu0 %v2858_v63 }
  0xaf   :  { %2889 = vmatpush3.bf16.msra.mxu1 %v2888_v62 }
  0xb0   :  { %10 = vsyncpa [#allocation3], 0  ;;  %2891 = vmatprep.subr.bf16.mxu1 %v2890_v3  ;;  %v2894_v16 = vpack.c.bf16 %v406_v8, %v405_v7  ;;  %v390_v17 = vld [vmem:[%s4795_s1 + $0xb48] sm:$0xff]  ;;  %v375_v18 = vld [vmem:[%s4795_s1 + $0xad0] sm:$0xff]  ;;  %v2864_v22 = vpack.c.bf16 %v358_v14, %v357_v11  ;;  %vm3083_vm0 = vmmov 0   ;;  %vm1858_vm2 = vcmask 261120  }
  0xb1   :  { %v376_v19 = vld [vmem:[%s4795_s1 + $0xad8] sm:$0xff]  ;;  %v407_v20 = vld [vmem:[%s4795_s1 + $0xbd0] sm:$0xff]  ;;  %2861 = vmatpush3.bf16.msra.mxu0 %v2860_v9  ;;  %v2896_v23 = vpack.c.bf16 %v390_v17, %v389_v15  ;;  %v377_v30 = vld [vmem:[%s4795_s1 + $0xae0] sm:$0xff]  ;;  %s3085_s11 = smov [#allocation2]  }
  0xb2   :  { %v408_v21 = vld [vmem:[%s4795_s1 + $0xbd8] sm:$0xff]  ;;  %2863 = vmatprep.subr.bf16.mxu0 %v2862_v12  ;;  %v2866_v24 = vpack.c.bf16 %v376_v19, %v375_v18  ;;  %v359_v25 = vld [vmem:[%s4795_s1 + $0xa50] sm:$0xff]  ;;  %v378_v32 = vld [vmem:[%s4795_s1 + $0xae8] sm:$0xff]  ;;  %s1939_s12 = sshll.u32 %s3085_s11, 4  ;;  %s1940_s12 = int_to_ptr.vmem [resolvable:$true] %s1939_s12 }
  0xb3   :  { %2893 = vmatpush3.bf16.msra.mxu1 %v2892_v10  ;;  %v360_v26 = vld [vmem:[%s4795_s1 + $0xa58] sm:$0xff]  ;;  %v391_v27 = vld [vmem:[%s4795_s1 + $0xb50] sm:$0xff]  ;;  %v2898_v28 = vpack.c.bf16 %v408_v21, %v407_v20  ;;  %v409_v42 = vld [vmem:[%s4795_s1 + $0xbe0] sm:$0xff]  ;;  %v2870_v37 = vpack.c.bf16 %v378_v32, %v377_v30  ;;  %s3057_s13 = scalar_lea.vmem %s1940_s12, 32  ;;  %p3062_p1 = scmp.lt.s32.totalorder %s1940_s12, %s1940_s12 }
  0xb4   :  { %2895 = vmatprep.subr.bf16.mxu1 %v2894_v16  ;;  %v392_v29 = vld [vmem:[%s4795_s1 + $0xb58] sm:$0xff]  ;;  %v410_v35 = vld [vmem:[%s4795_s1 + $0xbe8] sm:$0xff]  ;;  %v2868_v36 = vpack.c.bf16 %v360_v26, %v359_v25  ;;  %v361_v38 = vld [vmem:[%s4795_s1 + $0xa60] sm:$0xff]  ;;  %p3058_p0 = scmp.ne.s32.totalorder %s1940_s12, %s3057_s13  ;;  %p3063_p2 = scmp.lt.s32.totalorder %s3057_s13, %s3057_s13 }
  0xb5   :  { %2865 = vmatpush3.bf16.msra.mxu0 %v2864_v22  ;;  %v2900_v52 = vpack.c.bf16 %v392_v29, %v391_v27  ;;  %v362_v39 = vld [vmem:[%s4795_s1 + $0xa68] sm:$0xff]  ;;  %v393_v40 = vld [vmem:[%s4795_s1 + $0xb60] sm:$0xff]  ;;  %v2902_v41 = vpack.c.bf16 %v410_v35, %v409_v42  ;;  %v379_v44 = vld [vmem:[%s4795_s1 + $0xaf0] sm:$0xff] }
  0xb6   :  { %2867 = vmatprep.subr.bf16.mxu0 %v2866_v24  ;;  %v394_v43 = vld [vmem:[%s4795_s1 + $0xb68] sm:$0xff]  ;;  %v380_v46 = vld [vmem:[%s4795_s1 + $0xaf8] sm:$0xff]  ;;  %v411_v47 = vld [vmem:[%s4795_s1 + $0xbf0] sm:$0xff]  ;;  %v2872_v49 = vpack.c.bf16 %v362_v39, %v361_v38  ;;  %p3064_p3 = por %p3063_p2, %p3062_p1 }
  0xb7   :  { %2897 = vmatpush3.bf16.msra.mxu1 %v2896_v23  ;;  %v412_v48 = vld [vmem:[%s4795_s1 + $0xbf8] sm:$0xff]  ;;  %v27_v50 = vld [vmem:[%s4794_s0 + $0x30] sm:$0xff]  ;;  %v2904_v51 = vpack.c.bf16 %v394_v43, %v393_v40  ;;  %v2874_v53 = vpack.c.bf16 %v380_v46, %v379_v44  ;;  %v429_v45 = vld [vmem:[%s4795_s1 + $0xc80] sm:$0xff] }
  0xb8   :  { %2899 = vmatprep.subr.bf16.mxu1 %v2898_v28  ;;  %v363_v54 = vld [vmem:[%s4795_s1 + $0xa70] sm:$0xff]  ;;  %v364_v33 = vld [vmem:[%s4795_s1 + $0xa78] sm:$0xff]  ;;  %v2906_v56 = vpack.c.bf16 %v412_v48, %v411_v47  ;;  %v430_v58 = vld [vmem:[%s4795_s1 + $0xc88] sm:$0xff]  ;;  %v658_v61 = vcombine.high %v27_v50, %v27_v50  ;;  %v4382_v8 = vrot.slane %v27_v50, %v3266_v13  ;;  %p3065_p4 = pnand %p3064_p3, %p3058_p0 }
  0xb9   :  { %2869 = vmatpush3.bf16.msra.mxu0 %v2868_v36  ;;  %v395_v55 = vld [vmem:[%s4795_s1 + $0xb70] sm:$0xff]  ;;  %v396_v57 = vld [vmem:[%s4795_s1 + $0xb78] sm:$0xff]  ;;  %v461_v59 = vld [vmem:[%s4795_s1 + $0xd80] sm:$0xff]  ;;  %v2876_v62 = vpack.c.bf16 %v364_v33, %v363_v54  ;;  %v2910_v0 = vpack.c.bf16 %v430_v58, %v429_v45 }
  0xba   :  { %2871 = vmatprep.subr.bf16.mxu0 %v2870_v37  ;;  %v462_v60 = vld [vmem:[%s4795_s1 + $0xd88] sm:$0xff]  ;;  %v2908_v63 = vpack.c.bf16 %v396_v57, %v395_v55  ;;  %v413_v1 = vld [vmem:[%s4795_s1 + $0xc00] sm:$0xff]  ;;  %v431_v6 = vld [vmem:[%s4795_s1 + $0xc90] sm:$0xff]  ;;  %v4391_v10 = vrot.slane %v658_v61, %v3266_v13  ;;  %v673_v23 = vcombine.high %v4382_v8, %v4382_v8 }
  0xbb   :  { %2901 = vmatpush3.bf16.msra.mxu1 %v2900_v52  ;;  %v414_v2 = vld [vmem:[%s4795_s1 + $0xc08] sm:$0xff]  ;;  %v445_v3 = vld [vmem:[%s4795_s1 + $0xd00] sm:$0xff]  ;;  %v2942_v4 = vpack.c.bf16 %v462_v60, %v461_v59  ;;  %v432_v7 = vld [vmem:[%s4795_s1 + $0xc98] sm:$0xff] }
  0xbc   :  { %2903 = vmatprep.subr.bf16.mxu1 %v2902_v41  ;;  %v446_v5 = vld [vmem:[%s4795_s1 + $0xd08] sm:$0xff]  ;;  %v463_v9 = vld [vmem:[%s4795_s1 + $0xd90] sm:$0xff]  ;;  %v464_v11 = vld [vmem:[%s4795_s1 + $0xd98] sm:$0xff]  ;;  %v2912_v12 = vpack.c.bf16 %v414_v2, %v413_v1  ;;  %v2914_v15 = vpack.c.bf16 %v432_v7, %v431_v6  ;;  %v674_v26 = vcombine.high %v4391_v10, %v4391_v10 }
  0xbd   :  { %2873 = vmatpush3.bf16.msra.mxu0 %v2872_v49  ;;  %v2944_v14 = vpack.c.bf16 %v446_v5, %v445_v3  ;;  %v415_v16 = vld [vmem:[%s4795_s1 + $0xc10] sm:$0xff]  ;;  %v416_v17 = vld [vmem:[%s4795_s1 + $0xc18] sm:$0xff]  ;;  %v2946_v19 = vpack.c.bf16 %v464_v11, %v463_v9  ;;  %v433_v21 = vld [vmem:[%s4795_s1 + $0xca0] sm:$0xff] }
  0xbe   :  { %2875 = vmatprep.subr.bf16.mxu0 %v2874_v53  ;;  %v447_v18 = vld [vmem:[%s4795_s1 + $0xd10] sm:$0xff]  ;;  %v448_v20 = vld [vmem:[%s4795_s1 + $0xd18] sm:$0xff]  ;;  %v434_v22 = vld [vmem:[%s4795_s1 + $0xca8] sm:$0xff]  ;;  %v2916_v27 = vpack.c.bf16 %v416_v17, %v415_v16 }
  0xbf   :  { %2905 = vmatpush3.bf16.msra.mxu1 %v2904_v51  ;;  %v465_v24 = vld [vmem:[%s4795_s1 + $0xda0] sm:$0xff]  ;;  %v466_v25 = vld [vmem:[%s4795_s1 + $0xda8] sm:$0xff]  ;;  %v2948_v28 = vpack.c.bf16 %v448_v20, %v447_v18  ;;  %v2918_v29 = vpack.c.bf16 %v434_v22, %v433_v21  ;;  %v435_v35 = vld [vmem:[%s4795_s1 + $0xcb0] sm:$0xff] }
  0xc0   :  { %2907 = vmatprep.subr.bf16.mxu1 %v2906_v56  ;;  %v418_v30 = vld [vmem:[%s4795_s1 + $0xc28] sm:$0xff]  ;;  %v449_v32 = vld [vmem:[%s4795_s1 + $0xd20] sm:$0xff]  ;;  %v2950_v42 = vpack.c.bf16 %v466_v25, %v465_v24  ;;  %v436_v36 = vld [vmem:[%s4795_s1 + $0xcb8] sm:$0xff] }
  0xc1   :  { %2877 = vmatpush3.bf16.msra.mxu0 %v2876_v62  ;;  %v467_v52 = vld [vmem:[%s4795_s1 + $0xdb0] sm:$0xff]  ;;  %v468_v37 = vld [vmem:[%s4795_s1 + $0xdb8] sm:$0xff]  ;;  %v2922_v40 = vpack.c.bf16 %v436_v36, %v435_v35  ;;  %v437_v48 = vld [vmem:[%s4795_s1 + $0xcc0] sm:$0xff] }
  0xc2   :  { %2911 = vmatprep.subr.bf16.mxu0 %v2910_v0  ;;  %v419_v41 = vld [vmem:[%s4795_s1 + $0xc30] sm:$0xff]  ;;  %v420_v43 = vld [vmem:[%s4795_s1 + $0xc38] sm:$0xff]  ;;  %v2954_v46 = vpack.c.bf16 %v468_v37, %v467_v52  ;;  %v438_v49 = vld [vmem:[%s4795_s1 + $0xcc8] sm:$0xff] }
  0xc3   :  { %2909 = vmatpush3.bf16.msra.mxu1 %v2908_v63  ;;  %v451_v44 = vld [vmem:[%s4795_s1 + $0xd30] sm:$0xff]  ;;  %v452_v47 = vld [vmem:[%s4795_s1 + $0xd38] sm:$0xff]  ;;  %v469_v50 = vld [vmem:[%s4795_s1 + $0xdc0] sm:$0xff]  ;;  %v2924_v53 = vpack.c.bf16 %v420_v43, %v419_v41  ;;  %v2926_v33 = vpack.c.bf16 %v438_v49, %v437_v48 }
  0xc4   :  { %2943 = vmatprep.subr.bf16.mxu1 %v2942_v4  ;;  %1489 = vmatmul.mubr.f32.vlgmr.msra.gmra.mrb[10].mxu0 %v4175_v31  ;;  %v417_v31 = vld [vmem:[%s4795_s1 + $0xc20] sm:$0xff]  ;;  %v470_v51 = vld [vmem:[%s4795_s1 + $0xdc8] sm:$0xff]  ;;  %v2956_v54 = vpack.c.bf16 %v452_v47, %v451_v44  ;;  %v439_v59 = vld [vmem:[%s4795_s1 + $0xcd0] sm:$0xff] }
  0xc5   :  { %2913 = vmatpush3.bf16.msra.mxu0 %v2912_v12  ;;  %1628 = vmatprep.mubr.f32.mxu0 %v673_v23  ;;  %v2920_v38 = vpack.c.bf16 %v418_v30, %v417_v31  ;;  %v421_v55 = vld [vmem:[%s4795_s1 + $0xc40] sm:$0xff]  ;;  %v422_v56 = vld [vmem:[%s4795_s1 + $0xc48] sm:$0xff]  ;;  %v2958_v45 = vpack.c.bf16 %v470_v51, %v469_v50  ;;  %v440_v60 = vld [vmem:[%s4795_s1 + $0xcd8] sm:$0xff] }
  0xc6   :  { %1559 = vmatmul.mubr.f32.vlgmr.msra.gmra.mrb[10].mxu1 %v4184_v34  ;;  %2915 = vmatprep.subr.bf16.mxu0 %v2914_v15  ;;  %v450_v34 = vld [vmem:[%s4795_s1 + $0xd28] sm:$0xff]  ;;  %v453_v57 = vld [vmem:[%s4795_s1 + $0xd40] sm:$0xff]  ;;  %v471_v61 = vld [vmem:[%s4795_s1 + $0xdd0] sm:$0xff]  ;;  %v2928_v63 = vpack.c.bf16 %v422_v56, %v421_v55  ;;  %v2930_v1 = vpack.c.bf16 %v440_v60, %v439_v59 }
  0xc7   :  { %2945 = vmatpush3.bf16.msra.mxu1 %v2944_v14  ;;  %1698 = vmatprep.mubr.f32.mxu1 %v674_v26  ;;  %v2952_v39 = vpack.c.bf16 %v450_v34, %v449_v32  ;;  %v454_v58 = vld [vmem:[%s4795_s1 + $0xd48] sm:$0xff]  ;;  %v472_v62 = vld [vmem:[%s4795_s1 + $0xdd8] sm:$0xff]  ;;  %v423_v2 = vld [vmem:[%s4795_s1 + $0xc50] sm:$0xff] }
  0xc8   :  { %2947 = vmatprep.subr.bf16.mxu1 %v2946_v19  ;;  %v2960_v0 = vpack.c.bf16 %v454_v58, %v453_v57  ;;  %v424_v3 = vld [vmem:[%s4795_s1 + $0xc58] sm:$0xff]  ;;  %v455_v4 = vld [vmem:[%s4795_s1 + $0xd50] sm:$0xff]  ;;  %v2962_v5 = vpack.c.bf16 %v472_v62, %v471_v61  ;;  %v441_v7 = vld [vmem:[%s4795_s1 + $0xce0] sm:$0xff] }
  0xc9   :  { %2917 = vmatpush3.bf16.msra.mxu0 %v2916_v27  ;;  %v456_v6 = vld [vmem:[%s4795_s1 + $0xd58] sm:$0xff]  ;;  %v442_v9 = vld [vmem:[%s4795_s1 + $0xce8] sm:$0xff]  ;;  %v473_v11 = vld [vmem:[%s4795_s1 + $0xde0] sm:$0xff]  ;;  %v2932_v14 = vpack.c.bf16 %v424_v3, %v423_v2 }
  0xca   :  { %2919 = vmatprep.subr.bf16.mxu0 %v2918_v29  ;;  %v474_v12 = vld [vmem:[%s4795_s1 + $0xde8] sm:$0xff]  ;;  %v2964_v15 = vpack.c.bf16 %v456_v6, %v455_v4  ;;  %v2934_v16 = vpack.c.bf16 %v442_v9, %v441_v7  ;;  %v425_v17 = vld [vmem:[%s4795_s1 + $0xc60] sm:$0xff]  ;;  %v443_v22 = vld [vmem:[%s4795_s1 + $0xcf0] sm:$0xff] }
  0xcb   :  { %2949 = vmatpush3.bf16.msra.mxu1 %v2948_v28  ;;  %v426_v18 = vld [vmem:[%s4795_s1 + $0xc68] sm:$0xff]  ;;  %v457_v19 = vld [vmem:[%s4795_s1 + $0xd60] sm:$0xff]  ;;  %v2966_v20 = vpack.c.bf16 %v474_v12, %v473_v11  ;;  %v444_v23 = vld [vmem:[%s4795_s1 + $0xcf8] sm:$0xff] }
  0xcc   :  { %2951 = vmatprep.subr.bf16.mxu1 %v2950_v42  ;;  %v458_v21 = vld [vmem:[%s4795_s1 + $0xd68] sm:$0xff]  ;;  %v475_v24 = vld [vmem:[%s4795_s1 + $0xdf0] sm:$0xff]  ;;  %v476_v25 = vld [vmem:[%s4795_s1 + $0xdf8] sm:$0xff]  ;;  %v2936_v26 = vpack.c.bf16 %v426_v18, %v425_v17  ;;  %v2938_v29 = vpack.c.bf16 %v444_v23, %v443_v22 }
  0xcd   :  { %2921 = vmatpush3.bf16.msra.mxu0 %v2920_v38  ;;  %v28_v27 = vld [vmem:[%s4794_s0 + $0x38] sm:$0xff]  ;;  %v2968_v28 = vpack.c.bf16 %v458_v21, %v457_v19  ;;  %v427_v31 = vld [vmem:[%s4795_s1 + $0xc70] sm:$0xff]  ;;  %v2970_v42 = vpack.c.bf16 %v476_v25, %v475_v24  ;;  %v493_v35 = vld [vmem:[%s4795_s1 + $0xe80] sm:$0xff] }
  0xce   :  { %2923 = vmatprep.subr.bf16.mxu0 %v2922_v40  ;;  %v428_v30 = vld [vmem:[%s4795_s1 + $0xc78] sm:$0xff]  ;;  %v459_v32 = vld [vmem:[%s4795_s1 + $0xd70] sm:$0xff]  ;;  %v494_v36 = vld [vmem:[%s4795_s1 + $0xe88] sm:$0xff]  ;;  %v675_v38 = vcombine.high %v28_v27, %v28_v27  ;;  %v4589_v51 = vrot.slane %v28_v27, %v3266_v13 }
  0xcf   :  { %2953 = vmatpush3.bf16.msra.mxu1 %v2952_v39  ;;  %v460_v34 = vld [vmem:[%s4795_s1 + $0xd78] sm:$0xff]  ;;  %v525_v52 = vld [vmem:[%s4795_s1 + $0xf80] sm:$0xff]  ;;  %v526_v37 = vld [vmem:[%s4795_s1 + $0xf88] sm:$0xff]  ;;  %v2940_v39 = vpack.c.bf16 %v428_v30, %v427_v31  ;;  %v2974_v41 = vpack.c.bf16 %v494_v36, %v493_v35 }
  0xd0   :  { %2955 = vmatprep.subr.bf16.mxu1 %v2954_v46  ;;  %v2972_v40 = vpack.c.bf16 %v460_v34, %v459_v32  ;;  %v477_v43 = vld [vmem:[%s4795_s1 + $0xe00] sm:$0xff]  ;;  %v478_v44 = vld [vmem:[%s4795_s1 + $0xe08] sm:$0xff]  ;;  %v3006_v47 = vpack.c.bf16 %v526_v37, %v525_v52  ;;  %v495_v49 = vld [vmem:[%s4795_s1 + $0xe90] sm:$0xff] }
  0xd1   :  { %2925 = vmatpush3.bf16.msra.mxu0 %v2924_v53  ;;  %v509_v46 = vld [vmem:[%s4795_s1 + $0xf00] sm:$0xff]  ;;  %v510_v48 = vld [vmem:[%s4795_s1 + $0xf08] sm:$0xff]  ;;  %v496_v50 = vld [vmem:[%s4795_s1 + $0xe98] sm:$0xff]  ;;  %v2976_v55 = vpack.c.bf16 %v478_v44, %v477_v43 }
  0xd2   :  { %2927 = vmatprep.subr.bf16.mxu0 %v2926_v33  ;;  %v527_v53 = vld [vmem:[%s4795_s1 + $0xf90] sm:$0xff]  ;;  %v4598_v33 = vrot.slane %v675_v38, %v3266_v13  ;;  %v3008_v56 = vpack.c.bf16 %v510_v48, %v509_v46  ;;  %v2978_v57 = vpack.c.bf16 %v496_v50, %v495_v49  ;;  %v480_v58 = vld [vmem:[%s4795_s1 + $0xe18] sm:$0xff]  ;;  %v497_v61 = vld [vmem:[%s4795_s1 + $0xea0] sm:$0xff] }
  0xd3   :  { %2957 = vmatpush3.bf16.msra.mxu1 %v2956_v54  ;;  %v528_v54 = vld [vmem:[%s4795_s1 + $0xf98] sm:$0xff]  ;;  %v511_v59 = vld [vmem:[%s4795_s1 + $0xf10] sm:$0xff]  ;;  %v498_v62 = vld [vmem:[%s4795_s1 + $0xea8] sm:$0xff] }
  0xd4   :  { %2959 = vmatprep.subr.bf16.mxu1 %v2958_v45  ;;  %v479_v45 = vld [vmem:[%s4795_s1 + $0xe10] sm:$0xff]  ;;  %v3010_v13 = vpack.c.bf16 %v528_v54, %v527_v53  ;;  %v512_v60 = vld [vmem:[%s4795_s1 + $0xf18] sm:$0xff]  ;;  %v691_v2 = vcombine.high %v4598_v33, %v4598_v33  ;;  %v482_v6 = vld [vmem:[%s4795_s1 + $0xe28] sm:$0xff] }
  0xd5   :  { %2929 = vmatpush3.bf16.msra.mxu0 %v2928_v63  ;;  %v690_v63 = vcombine.high %v4589_v51, %v4589_v51  ;;  %v2980_v3 = vpack.c.bf16 %v480_v58, %v479_v45  ;;  %v3012_v4 = vpack.c.bf16 %v512_v60, %v511_v59  ;;  %v513_v7 = vld [vmem:[%s4795_s1 + $0xf20] sm:$0xff]  ;;  %v499_v11 = vld [vmem:[%s4795_s1 + $0xeb0] sm:$0xff]  ;;  %v500_v12 = vld [vmem:[%s4795_s1 + $0xeb8] sm:$0xff] }
  0xd6   :  { %2931 = vmatprep.subr.bf16.mxu0 %v2930_v1  ;;  %v530_v1 = vld [vmem:[%s4795_s1 + $0xfa8] sm:$0xff]  ;;  %v2986_v18 = vpack.c.bf16 %v500_v12, %v499_v11  ;;  %v483_v19 = vld [vmem:[%s4795_s1 + $0xe30] sm:$0xff]  ;;  %v516_v23 = vld [vmem:[%s4795_s1 + $0xf38] sm:$0xff] }
  0xd7   :  { %2961 = vmatpush3.bf16.msra.mxu1 %v2960_v0  ;;  %v529_v0 = vld [vmem:[%s4795_s1 + $0xfa0] sm:$0xff]  ;;  %v515_v21 = vld [vmem:[%s4795_s1 + $0xf30] sm:$0xff]  ;;  %v502_v25 = vld [vmem:[%s4795_s1 + $0xec8] sm:$0xff] }
  0xd8   :  { %2963 = vmatprep.subr.bf16.mxu1 %v2962_v5  ;;  %v2982_v5 = vpack.c.bf16 %v498_v62, %v497_v61  ;;  %v3014_v9 = vpack.c.bf16 %v530_v1, %v529_v0  ;;  %v501_v24 = vld [vmem:[%s4795_s1 + $0xec0] sm:$0xff]  ;;  %v534_v27 = vld [vmem:[%s4795_s1 + $0xfc8] sm:$0xff]  ;;  %v503_v36 = vld [vmem:[%s4795_s1 + $0xed0] sm:$0xff] }
  0xd9   :  { %2933 = vmatpush3.bf16.msra.mxu0 %v2932_v14  ;;  %v531_v14 = vld [vmem:[%s4795_s1 + $0xfb0] sm:$0xff]  ;;  %v2990_v31 = vpack.c.bf16 %v502_v25, %v501_v24  ;;  %v485_v30 = vld [vmem:[%s4795_s1 + $0xe40] sm:$0xff]  ;;  %v486_v32 = vld [vmem:[%s4795_s1 + $0xe48] sm:$0xff] }
  0xda   :  { %2935 = vmatprep.subr.bf16.mxu0 %v2934_v16  ;;  %v518_v35 = vld [vmem:[%s4795_s1 + $0xf48] sm:$0xff]  ;;  %v504_v52 = vld [vmem:[%s4795_s1 + $0xed8] sm:$0xff]  ;;  %v535_v37 = vld [vmem:[%s4795_s1 + $0xfd0] sm:$0xff] }
  0xdb   :  { %2965 = vmatpush3.bf16.msra.mxu1 %v2964_v15  ;;  %v532_v15 = vld [vmem:[%s4795_s1 + $0xfb8] sm:$0xff]  ;;  %v487_v43 = vld [vmem:[%s4795_s1 + $0xe50] sm:$0xff]  ;;  %v505_v49 = vld [vmem:[%s4795_s1 + $0xee0] sm:$0xff] }
  0xdc   :  { %2967 = vmatprep.subr.bf16.mxu1 %v2966_v20  ;;  %v484_v20 = vld [vmem:[%s4795_s1 + $0xe38] sm:$0xff]  ;;  %v3018_v22 = vpack.c.bf16 %v532_v15, %v531_v14  ;;  %v519_v46 = vld [vmem:[%s4795_s1 + $0xf50] sm:$0xff]  ;;  %v506_v50 = vld [vmem:[%s4795_s1 + $0xee8] sm:$0xff] }
  0xdd   :  { %2937 = vmatpush3.bf16.msra.mxu0 %v2936_v26  ;;  %v533_v26 = vld [vmem:[%s4795_s1 + $0xfc0] sm:$0xff]  ;;  %v536_v38 = vld [vmem:[%s4795_s1 + $0xfd8] sm:$0xff]  ;;  %v538_v54 = vld [vmem:[%s4795_s1 + $0xfe8] sm:$0xff] }
  0xde   :  { %2939 = vmatprep.subr.bf16.mxu0 %v2938_v29  ;;  %v3020_v29 = vpack.c.bf16 %v516_v23, %v515_v21  ;;  %v3022_v34 = vpack.c.bf16 %v534_v27, %v533_v26  ;;  %v488_v44 = vld [vmem:[%s4795_s1 + $0xe58] sm:$0xff]  ;;  %v537_v53 = vld [vmem:[%s4795_s1 + $0xfe0] sm:$0xff]  ;;  %v490_v58 = vld [vmem:[%s4795_s1 + $0xe68] sm:$0xff] }
  0xdf   :  { %2969 = vmatpush3.bf16.msra.mxu1 %v2968_v28  ;;  %v2988_v28 = vpack.c.bf16 %v484_v20, %v483_v19  ;;  %v520_v48 = vld [vmem:[%s4795_s1 + $0xf58] sm:$0xff]  ;;  %v489_v45 = vld [vmem:[%s4795_s1 + $0xe60] sm:$0xff]  ;;  %v3030_v60 = vpack.c.bf16 %v538_v54, %v537_v53  ;;  %v522_v61 = vld [vmem:[%s4795_s1 + $0xf68] sm:$0xff]  ;;  %v3084_v53 = vmov 0.0  }
  0xe0   :  { %2971 = vmatprep.subr.bf16.mxu1 %v2970_v42  ;;  %v517_v42 = vld [vmem:[%s4795_s1 + $0xf40] sm:$0xff]  ;;  %v507_v62 = vld [vmem:[%s4795_s1 + $0xef0] sm:$0xff]  ;;  %v492_v12 = vld [vmem:[%s4795_s1 + $0xe78] sm:$0xff] }
  0xe1   :  { %2941 = vmatpush3.bf16.msra.mxu0 %v2940_v39  ;;  %v2992_v39 = vpack.c.bf16 %v486_v32, %v485_v30  ;;  %v521_v59 = vld [vmem:[%s4795_s1 + $0xf60] sm:$0xff]  ;;  %v491_v11 = vld [vmem:[%s4795_s1 + $0xe70] sm:$0xff] }
  0xe2   :  { %2975 = vmatprep.subr.bf16.mxu0 %v2974_v41  ;;  %v2994_v41 = vpack.c.bf16 %v504_v52, %v503_v36  ;;  %v1947_v0 = vld [vmem:[%s4796_s2] ss:$0 sm:$0xff]  ;;  %v3004_v19 = vpack.c.bf16 %v492_v12, %v491_v11 }
  0xe3   :  { %2973 = vmatpush3.bf16.msra.mxu1 %v2972_v40  ;;  %v3024_v40 = vpack.c.bf16 %v518_v35, %v517_v42 }
  0xe4   :  { %3007 = vmatprep.subr.bf16.mxu1 %v3006_v47  ;;  %1629 = vmatmul.mubr.f32.vlgmr.msra.gmra.mrb[12].mxu0 %v4382_v8  ;;  %v481_v8 = vld [vmem:[%s4795_s1 + $0xe20] sm:$0xff]  ;;  %v3026_v47 = vpack.c.bf16 %v536_v38, %v535_v37  ;;  %v1848_v38 = vld [vmem:[%s4797_s3 + $0x8] sm:$0xff] }
  0xe5   :  { %2977 = vmatpush3.bf16.msra.mxu0 %v2976_v55  ;;  %1768 = vmatprep.mubr.f32.mxu0 %v690_v63  ;;  %v2984_v16 = vpack.c.bf16 %v482_v6, %v481_v8  ;;  %v2996_v55 = vpack.c.bf16 %v488_v44, %v487_v43  ;;  %v508_v63 = vld [vmem:[%s4795_s1 + $0xef8] sm:$0xff]  ;;  %v3000_v6 = vpack.c.bf16 %v490_v58, %v489_v45  ;;  %v3082_v44 = vmov 0.0|0.0  }
  0xe6   :  { %1699 = vmatmul.mubr.f32.vlgmr.msra.gmra.mrb[12].mxu1 %v4391_v10  ;;  %2979 = vmatprep.subr.bf16.mxu0 %v2978_v57  ;;  %v514_v10 = vld [vmem:[%s4795_s1 + $0xf28] sm:$0xff]  ;;  %v2998_v57 = vpack.c.bf16 %v506_v50, %v505_v49 }
  0xe7   :  { %3009 = vmatpush3.bf16.msra.mxu1 %v3008_v56  ;;  %1838 = vmatprep.mubr.f32.mxu1 %v691_v2  ;;  %v3016_v17 = vpack.c.bf16 %v514_v10, %v513_v7  ;;  %v3028_v56 = vpack.c.bf16 %v520_v48, %v519_v46  ;;  %v3002_v10 = vpack.c.bf16 %v508_v63, %v507_v62  ;;  %v1850_v48 = vld [vmem:[%s4797_s3 + $0x18] sm:$0xff] }
  0xe8   :  { %3011 = vmatprep.subr.bf16.mxu1 %v3010_v13 }
  0xe9   :  { %2981 = vmatpush3.bf16.msra.mxu0 %v2980_v3  ;;  %v539_v3 = vld [vmem:[%s4795_s1 + $0xff0] sm:$0xff] }
  0xea   :  { %2983 = vmatprep.subr.bf16.mxu0 %v2982_v5 }
  0xeb   :  { %3013 = vmatpush3.bf16.msra.mxu1 %v3012_v4  ;;  %v540_v4 = vld [vmem:[%s4795_s1 + $0xff8] sm:$0xff] }
  0xec   :  { %3015 = vmatprep.subr.bf16.mxu1 %v3014_v9  ;;  %v3032_v9 = vpack.c.bf16 %v522_v61, %v521_v59  ;;  %v3034_v15 = vpack.c.bf16 %v540_v4, %v539_v3 }
  0xed   :  { %2985 = vmatpush3.bf16.msra.mxu0 %v2984_v16  ;;  %v523_v16 = vld [vmem:[%s4795_s1 + $0xf70] sm:$0xff] }
  0xee   :  { %2987 = vmatprep.subr.bf16.mxu0 %v2986_v18 }
  0xef   :  { %3017 = vmatpush3.bf16.msra.mxu1 %v3016_v17  ;;  %v524_v17 = vld [vmem:[%s4795_s1 + $0xf78] sm:$0xff] }
  0xf0   :  { %3019 = vmatprep.subr.bf16.mxu1 %v3018_v22  ;;  %v3036_v20 = vpack.c.bf16 %v524_v17, %v523_v16 }
  0xf1   :  { %2989 = vmatpush3.bf16.msra.mxu0 %v2988_v28 }
  0xf2   :  { %2991 = vmatprep.subr.bf16.mxu0 %v2990_v31 }
  0xf3   :  { %3021 = vmatpush3.bf16.msra.mxu1 %v3020_v29 }
  0xf4   :  { %3023 = vmatprep.subr.bf16.mxu1 %v3022_v34 }
  0xf5   :  { %2993 = vmatpush3.bf16.msra.mxu0 %v2992_v39 }
  0xf6   :  { %2995 = vmatprep.subr.bf16.mxu0 %v2994_v41 }
  0xf7   :  { %3025 = vmatpush3.bf16.msra.mxu1 %v3024_v40  ;;  %v1982_v13 = vpop.f32.mrb[0].mxu0 }
  0xf8   :  { %3027 = vmatprep.subr.bf16.mxu1 %v3026_v47  ;;  %v1983_v1 = vpop.f32.mrb[1].mxu0  ;;  %v1849_v47 = vld [vmem:[%s4797_s3 + $0x10] sm:$0xff] }
  0xf9   :  { %v2017_v2 = vpop.f32.mrb[0].mxu1  ;;  %v1984_v5 = vadd.f32 %v1983_v1, %v1982_v13  ;;  %2997 = vmatpush3.bf16.msra.mxu0 %v2996_v55  ;;  %v3042_v50 = vpack.c.bf16 %v1850_v48, %v1849_v47 }
  0xfa   :  { %v2018_v8 = vpop.f32.mrb[1].mxu1  ;;  %2999 = vmatprep.subr.bf16.mxu0 %v2998_v57 }
  0xfb   :  { %v2019_v7 = vadd.f32 %v2018_v8, %v2017_v2  ;;  %3029 = vmatpush3.bf16.msra.mxu1 %v3028_v56  ;;  %v791_v14 = vadd.f32 %v1984_v5, %v1947_v0 }
  0xfc   :  { %3031 = vmatprep.subr.bf16.mxu1 %v3030_v60 }
  0xfd   :  { %v861_v18 = vadd.f32 %v2019_v7, %v791_v14  ;;  %3001 = vmatpush3.bf16.msra.mxu0 %v3000_v6 }
  0xfe   :  { %3003 = vmatprep.subr.bf16.mxu0 %v3002_v10 }
  0xff   :  { %3033 = vmatpush3.bf16.msra.mxu1 %v3032_v9 }
 0x100   :  { %3035 = vmatprep.subr.bf16.mxu1 %v3034_v15 }
 0x101   :  { %3005 = vmatpush3.bf16.msra.mxu0 %v3004_v19 }
 0x102   :  { %3038 = vmatprep.subr.bf16.mxu0 %v3082_v44 }
 0x103   :  { %3037 = vmatpush3.bf16.msra.mxu1 %v3036_v20 }
 0x104   :  { %1769 = vmatmul.mubr.f32.vlgmr.msra.gmra.mrb[14].mxu0 %v4589_v51 }
 0x105   :  { %2523 = vmatprep.mubr.msk.f32.mxu0 %vm3083_vm0, %v3084_v53 }
 0x106   :  { %1839 = vmatmul.mubr.f32.vlgmr.msra.gmra.mrb[14].mxu1 %v4598_v33  ;;  %v1847_v33 = vld [vmem:[%s4797_s3] sm:$0xff] }
 0x107   :  { %v3039_v41 = vpack.c.bf16 %v1848_v38, %v1847_v33 }
 0x109   :  { %3040 = vmatpush3.bf16.msra.mxu0 %v3039_v41 }
 0x10a   :  { %3041 = vmatprep.subr.bf16.mxu0 %v3082_v44 }
 0x10d   :  { %3043 = vmatpush3.bf16.msra.mxu0 %v3042_v50 }
 0x117   :  { %v2052_v21 = vpop.f32.mrb[2].mxu0 }
 0x118   :  { %v2053_v22 = vpop.f32.mrb[3].mxu0 }
 0x119   :  { %v2087_v23 = vpop.f32.mrb[2].mxu1  ;;  %v2054_v24 = vadd.f32 %v2053_v22, %v2052_v21 }
 0x11a   :  { %v2088_v25 = vpop.f32.mrb[3].mxu1 }
 0x11b   :  { %v2089_v26 = vadd.f32 %v2088_v25, %v2087_v23  ;;  %v931_v27 = vadd.f32 %v2054_v24, %v861_v18  ;;  %v1948_v23 = vld [vmem:[%s4798_s4] ss:$0 sm:$0xff] }
 0x11d   :  { %v1001_v28 = vadd.f32 %v2089_v26, %v931_v27 }
 0x137   :  { %v2122_v29 = vpop.f32.mrb[4].mxu0 }
 0x138   :  { %v2123_v31 = vpop.f32.mrb[5].mxu0 }
 0x139   :  { %v2157_v30 = vpop.f32.mrb[4].mxu1  ;;  %v2124_v32 = vadd.f32 %v2123_v31, %v2122_v29 }
 0x13a   :  { %v2158_v42 = vpop.f32.mrb[5].mxu1 }
 0x13b   :  { %v2159_v34 = vadd.f32 %v2158_v42, %v2157_v30  ;;  %v1071_v35 = vadd.f32 %v2124_v32, %v1001_v28 }
 0x13d   :  { %v1141_v36 = vadd.f32 %v2159_v34, %v1071_v35 }
 0x157   :  { %v2192_v52 = vpop.f32.mrb[6].mxu0 }
 0x158   :  { %v2193_v51 = vpop.f32.mrb[7].mxu0 }
 0x159   :  { %v2227_v37 = vpop.f32.mrb[6].mxu1  ;;  %v2194_v39 = vadd.f32 %v2193_v51, %v2192_v52 }
 0x15a   :  { %v2228_v40 = vpop.f32.mrb[7].mxu1 }
 0x15b   :  { %v2229_v43 = vadd.f32 %v2228_v40, %v2227_v37  ;;  %v1211_v46 = vadd.f32 %v2194_v39, %v1141_v36 }
 0x15d   :  { %v1281_v49 = vadd.f32 %v2229_v43, %v1211_v46 }
 0x177   :  { %v2262_v54 = vpop.f32.mrb[8].mxu0 }
 0x178   :  { %v2263_v55 = vpop.f32.mrb[9].mxu0 }
 0x179   :  { %v2297_v56 = vpop.f32.mrb[8].mxu1  ;;  %v2264_v57 = vadd.f32 %v2263_v55, %v2262_v54 }
 0x17a   :  { %v2298_v45 = vpop.f32.mrb[9].mxu1 }
 0x17b   :  { %v2299_v58 = vadd.f32 %v2298_v45, %v2297_v56  ;;  %v1351_v59 = vadd.f32 %v2264_v57, %v1281_v49 }
 0x17d   :  { %v1421_v13 = vadd.f32 %v2299_v58, %v1351_v59 }
 0x197   :  { %v2332_v60 = vpop.f32.mrb[10].mxu0 }
 0x198   :  { %v2333_v61 = vpop.f32.mrb[11].mxu0 }
 0x199   :  { %v2367_v62 = vpop.f32.mrb[10].mxu1  ;;  %v2334_v63 = vadd.f32 %v2333_v61, %v2332_v60 }
 0x19a   :  { %v2368_v0 = vpop.f32.mrb[11].mxu1 }
 0x19b   :  { %v2369_v1 = vadd.f32 %v2368_v0, %v2367_v62  ;;  %v1491_v2 = vadd.f32 %v2334_v63, %v1421_v13 }
 0x19d   :  { %v1561_v3 = vadd.f32 %v2369_v1, %v1491_v2 }
 0x1b7   :  { %v2402_v4 = vpop.f32.mrb[12].mxu0 }
 0x1b8   :  { %v2403_v5 = vpop.f32.mrb[13].mxu0 }
 0x1b9   :  { %v2437_v8 = vpop.f32.mrb[12].mxu1  ;;  %v2404_v6 = vadd.f32 %v2403_v5, %v2402_v4 }
 0x1ba   :  { %v2438_v7 = vpop.f32.mrb[13].mxu1 }
 0x1bb   :  { %v2439_v9 = vadd.f32 %v2438_v7, %v2437_v8  ;;  %v1631_v10 = vadd.f32 %v2404_v6, %v1561_v3 }
 0x1bd   :  { %v1701_v11 = vadd.f32 %v2439_v9, %v1631_v10 }
 0x1d7   :  { %v2472_v12 = vpop.f32.mrb[14].mxu0 }
 0x1d8   :  { %v2473_v14 = vpop.f32.mrb[15].mxu0 }
 0x1d9   :  { %v2507_v15 = vpop.f32.mrb[14].mxu1  ;;  %v2474_v16 = vadd.f32 %v2473_v14, %v2472_v12 }
 0x1da   :  { %v2508_v17 = vpop.f32.mrb[15].mxu1 }
 0x1db   :  { %v2509_v18 = vadd.f32 %v2508_v17, %v2507_v15  ;;  %v1771_v19 = vadd.f32 %v2474_v16, %v1701_v11 }
 0x1dd   :  { %v1841_v20 = vadd.f32 %v2509_v18, %v1771_v19 }
 0x1df   :  { %vm1844_vm1 = vcmp.ge.f32.partialorder %v1841_v20, 0.0  ;;  %v1845_v21 = vmul.f32 0.01, %v1841_v20 }
 0x1e1   :  { %v1846_v22 = vsel %vm1844_vm1, %v1841_v20, %v1845_v21 }
 0x1e2   :  { %2524 = vmatmul.mubr.msk.f32.vlgmr.msra.gmra.mrb[16].mxu0 %vm1858_vm2, %v1846_v22 }
 0x2b5   :  { %v1928_v24 = vpop.f32.mrb[16].mxu0 }
 0x2b6   :  { %v1929_v25 = vadd.f32 %v1948_v23, %v1928_v24  ;;  %v2525_v26 = vpop.f32.mrb[17].mxu0 }
 0x2b8   :  { %1932 = vst [vmem:[#allocation2] sm:$0x3] %v1929_v25 }
 0x2b9   :  { %3068 = shalt.err (!%p3065_p4)
}
 0x2ba   :  { %s3069_s16 = scalar_lea.hbm %s4799_s5, 32 }
 0x2bb   :  { %p3070_p5 = scmp.ne.s32.totalorder %s4799_s5, %s3069_s16  ;;  %p3073_p6 = scmp.lt.u32.totalorder %s3069_s16, %s4799_s5 }
 0x2bd   :  { %p3075_p7 = pnand %p3073_p6, %p3070_p5 }
 0x2bf   :  { %3078 = shalt.err (!%p3075_p7)
}
 0x2c0   :  { %1942 = dma.vmem_to_hbm [thread:$0]  %s1940_s12, 32, %s4799_s5, [#allocation3]  }
 0x2c1   :  { %3079 = dma.done.wait [#allocation3], 32  }
 0x2c2   :  { %3080 = vsyncadd [#allocation3], 4294967264 }
 0x2c3   :  { %1946 = vsyncpa [#allocation3], 1 }

</bundles_post_ra>
